<compile_context>
chip_gen: v6e
topology: v6e:2x2x1
jax: 0.10.0
libtpu: 0.0.40
codegen_flags: <defaults>
</compile_context>

<pallas_src>
import jax
import jax.numpy as jnp
import numpy as np
from jax.experimental import pallas as pl
from jax.experimental.pallas import tpu as pltpu

# ---- model dims (Discrete action branch) ------------------------------------
OBS_DIM = 32      # obs_dim (flat vector observation)
LATENT_DIM = 32   # latent_dim == encoder.embedding_size
ACTION_DIM = 6    # discrete action count
ACT_EMB = 64      # self.action_embedding_dim
ENC_HID = 64      # encoder MLP hidden width
INV_HID = 64      # inverse_model hidden_dim (hidden_depth=1, hidden_dim=64)

F_W = 32          # lane width of each stacked input field (== OBS_DIM == LATENT_DIM)
TM = 128          # batch rows per grid step (M-tile per perf review)

# ---- packed parameter slab: (P_H, 128), static row offsets ------------------
P_W1   = 0        # w1   (32, 64)                     lanes 0:64
P_W2   = 32       # w2   (64, 32)                     lanes 0:32
P_WM   = 96       # wm   (32, 32)                     lanes 0:32
P_ZT   = 128      # [wi1a (32,64) | wt_z (32,32)]     lanes 0:96   (shared LHS: z_t)
P_WI1B = 160      # wi1b (32, 64)                     lanes 0:64
P_WI2  = 192      # wi2  (64, 6 -> zero-pad 32)       lanes 0:32
P_B    = 256      # bias rows: b1, b2, bi1, bi2
P_H    = 264      # padded to a multiple of 8 sublanes

# ---- output slab: one lane-dense (TM, 256) store -----------------------------
O_ILOG, O_ZHAT, O_MEM, O_NMEM, O_ZT, O_ZT1 = 0, 32, 64, 96, 128, 160
O_W = 256         # 6 x 32-lane fields + 64 lanes pad -> two full vregs / sublane


def latent_mdp_kernel(x_ref, p_ref, out_ref):
    f32 = jnp.float32
    tm = out_ref.shape[0]

    # Sublane-stacked activations: free leading-axis views, no lane relayout.
    obs_pair  = x_ref[0:2].reshape(2 * tm, F_W)   # [obs ; next_obs] contiguous rows
    mem_in    = x_ref[2]                          # (tm, 32)
    mask      = x_ref[3]                          # (tm, 32)
    a_contrib = x_ref[4]                          # emb[a] @ wt_a + bt (wrapper gather)

    # Static views into the resident 128-lane parameter slab.
    w1   = p_ref[P_W1:P_W1 + OBS_DIM, 0:ENC_HID]                   # (32, 64)
    w2   = p_ref[P_W2:P_W2 + ENC_HID, 0:LATENT_DIM]                # (64, 32)
    wm   = p_ref[P_WM:P_WM + LATENT_DIM, 0:LATENT_DIM]             # (32, 32)
    w_zt = p_ref[P_ZT:P_ZT + LATENT_DIM, 0:INV_HID + LATENT_DIM]   # (32, 96)
    wi1b = p_ref[P_WI1B:P_WI1B + LATENT_DIM, 0:INV_HID]            # (32, 64)
    wi2  = p_ref[P_WI2:P_WI2 + INV_HID, 0:LATENT_DIM]              # (64, 32) cols>=6 zero
    b1   = p_ref[P_B + 0:P_B + 1, 0:ENC_HID]
    b2   = p_ref[P_B + 1:P_B + 2, 0:LATENT_DIM]
    bi1  = p_ref[P_B + 2:P_B + 3, 0:INV_HID]
    bi2  = p_ref[P_B + 3:P_B + 4, 0:LATENT_DIM]

    # --- encoder: first two layers batched over [obs ; next_obs] (2*tm rows) --
    h  = jnp.maximum(jnp.dot(obs_pair, w1, preferred_element_type=f32) + b1, 0.0)
    zb = jnp.dot(h, w2, preferred_element_type=f32) + b2           # (2*tm, 32)
    zb_t, zb_t1 = zb[:tm], zb[tm:]

    # Serial recurrent memory terms (true data dependency):
    # z_t, memory = encoder(obs, memory)
    z_t  = zb_t + jnp.dot(mem_in, wm, preferred_element_type=f32)
    mem1 = jnp.tanh(z_t)
    # z_t1, next_memory = encoder(next_obs, memory * next_memory_mask)
    z_t1 = zb_t1 + jnp.dot(mem1 * mask, wm, preferred_element_type=f32)
    mem2 = jnp.tanh(z_t1)

    # --- z_t branch: single (tm,32)x(32,96) matmul -> [hi_part | z_hat_part] --
    zt_mix = jnp.dot(z_t, w_zt, preferred_element_type=f32)        # (tm, 96)
    hi = jnp.maximum(
        zt_mix[:, 0:INV_HID]
        + jnp.dot(z_t1, wi1b, preferred_element_type=f32) + bi1, 0.0)
    # wi2 / bi2 are zero-padded past ACTION_DIM, so logits cols 6:32 are exactly 0.
    i_logits = jnp.dot(hi, wi2, preferred_element_type=f32) + bi2  # (tm, 32)
    z_hat = zt_mix[:, INV_HID:INV_HID + LATENT_DIM] + a_contrib    # bt pre-folded

    # Single lane-dense unmasked store; explicit pad keeps lanes 192:256 defined.
    pad = jnp.zeros((tm, O_W - (O_ZT1 + LATENT_DIM)), f32)
    out_ref[...] = jnp.concatenate(
        [i_logits, z_hat, mem1, mem2, z_t, z_t1, pad], axis=-1)


def init_params(key):
    ks = jax.random.split(key, 12)
    n = lambda k, shape, s=0.1: (s * jax.random.normal(k, shape)).astype(jnp.float32)
    return {
        # nn.Embedding(action_dim, 64)
        "emb": n(ks[0], (ACTION_DIM, ACT_EMB), 1.0),
        # encoder: Linear(32,64) -> ReLU -> Linear(64,32) + memory @ wm; new_mem = tanh(z)
        "w1": n(ks[1], (OBS_DIM, ENC_HID)), "b1": n(ks[2], (1, ENC_HID)),
        "w2": n(ks[3], (ENC_HID, LATENT_DIM)), "b2": n(ks[4], (1, LATENT_DIM)),
        "wm": n(ks[5], (LATENT_DIM, LATENT_DIM)),
        # inverse_model: Linear(2L, 64) -> ReLU -> Linear(64, A)
        "wi1": n(ks[6], (2 * LATENT_DIM, INV_HID)), "bi1": n(ks[7], (1, INV_HID)),
        "wi2": n(ks[8], (INV_HID, ACTION_DIM)), "bi2": n(ks[9], (1, ACTION_DIM)),
        # transition_model: Linear(L + 64, L)
        "wt": n(ks[10], (LATENT_DIM + ACT_EMB, LATENT_DIM)), "bt": n(ks[11], (1, LATENT_DIM)),
    }


def pack_params(params):
    """Offline: pack all weights into one 128-lane VMEM slab (computed once,
    resident across grid steps) and pre-fold the action embedding + transition
    bias into a tiny (A, L) gather table."""
    P = jnp.zeros((P_H, 128), jnp.float32)
    P = P.at[P_W1:P_W1 + OBS_DIM, 0:ENC_HID].set(params["w1"])
    P = P.at[P_W2:P_W2 + ENC_HID, 0:LATENT_DIM].set(params["w2"])
    P = P.at[P_WM:P_WM + LATENT_DIM, 0:LATENT_DIM].set(params["wm"])
    # co-located z_t-branch weights: [wi1a | wt_z] share the z_t LHS
    P = P.at[P_ZT:P_ZT + LATENT_DIM, 0:INV_HID].set(params["wi1"][:LATENT_DIM])
    P = P.at[P_ZT:P_ZT + LATENT_DIM, INV_HID:INV_HID + LATENT_DIM].set(
        params["wt"][:LATENT_DIM])
    P = P.at[P_WI1B:P_WI1B + LATENT_DIM, 0:INV_HID].set(params["wi1"][LATENT_DIM:])
    P = P.at[P_WI2:P_WI2 + INV_HID, 0:ACTION_DIM].set(params["wi2"])
    P = P.at[P_B + 0, 0:ENC_HID].set(params["b1"][0])
    P = P.at[P_B + 1, 0:LATENT_DIM].set(params["b2"][0])
    P = P.at[P_B + 2, 0:INV_HID].set(params["bi1"][0])
    P = P.at[P_B + 3, 0:ACTION_DIM].set(params["bi2"][0])
    # a_t @ wt_a + bt  ==  gather into (emb @ wt_a + bt): free algebraic fusion.
    a_table = params["emb"] @ params["wt"][LATENT_DIM:] + params["bt"]   # (A, 32)
    return P, a_table


@jax.jit
def latent_mdp_forward(obs, action, next_obs, memory, next_memory_mask,
                       p_slab, a_table):
    bt = obs.shape[0]
    num_tiles = bt // TM
    # Tiny (B,)-row gather done by XLA; replaces the in-kernel one-hot matmul.
    a_contrib = a_table[action[:, 0]]                                   # (B, 32)
    # Sublane-stacked input slab: every field is a free leading-axis slice in-kernel.
    x = jnp.stack([obs, next_obs, memory, next_memory_mask, a_contrib], axis=0)

    out = pl.pallas_call(
        latent_mdp_kernel,
        out_shape=jax.ShapeDtypeStruct((bt, O_W), jnp.float32),
        grid=(num_tiles,),
        in_specs=[
            pl.BlockSpec((5, TM, F_W), lambda i: (0, i, 0)),   # batch-tiled acts
            pl.BlockSpec((P_H, 128), lambda i: (0, 0)),        # resident weights
        ],
        out_specs=pl.BlockSpec((TM, O_W), lambda i: (i, 0)),
        compiler_params=pltpu.CompilerParams(
            dimension_semantics=("parallel",)),                # 2nd TC on v7x; neutral on v5e/v6e
    )(x, p_slab)

    i_logits = out[:, O_ILOG:O_ILOG + ACTION_DIM]
    z_hat_t1 = out[:, O_ZHAT:O_ZHAT + LATENT_DIM]
    mem_out  = out[:, O_MEM:O_MEM + LATENT_DIM]
    next_mem = out[:, O_NMEM:O_NMEM + LATENT_DIM]
    z_t      = out[:, O_ZT:O_ZT + LATENT_DIM]
    z_t1     = out[:, O_ZT1:O_ZT1 + LATENT_DIM]
    return i_logits, z_hat_t1, mem_out, next_mem, z_t, z_t1


def reference_forward(obs, action, next_obs, memory, mask, params):
    """Pure-JAX reference with the same assumed encoder/actor architecture."""
    def encoder(o, m):
        h = jax.nn.relu(o @ params["w1"] + params["b1"])
        z = h @ params["w2"] + params["b2"] + m @ params["wm"]
        return z, jnp.tanh(z)
    a_t = params["emb"][action[:, 0]]                       # embedding(...).squeeze(1)
    z_t, mem = encoder(obs, memory)
    z_t1, nmem = encoder(next_obs, mem * mask)
    hi = jax.nn.relu(jnp.concatenate([z_t, z_t1], axis=1) @ params["wi1"]
                     + params["bi1"])
    i_logits = hi @ params["wi2"] + params["bi2"]
    z_hat = jnp.concatenate([z_t, a_t], axis=1) @ params["wt"] + params["bt"]
    return i_logits, z_hat, mem, nmem, z_t, z_t1


if __name__ == "__main__":
    # Batched across environments/timesteps per perf review (the only lever that
    # materially changes wall-clock at this per-row FLOP count).
    B = 256
    assert B % TM == 0 and TM % 8 == 0, "batch must be a multiple of the M-tile"
    assert OBS_DIM == LATENT_DIM == F_W, "packed-slab layout assumes 32-wide fields"

    key = jax.random.PRNGKey(0)
    k_par, k_obs, k_nobs, k_act, k_mem, k_mask = jax.random.split(key, 6)

    params = init_params(k_par)
    p_slab, a_table = pack_params(params)     # computed once, reused every step

    obs = jax.random.normal(k_obs, (B, OBS_DIM), dtype=jnp.float32)
    next_obs = jax.random.normal(k_nobs, (B, OBS_DIM), dtype=jnp.float32)
    action = jax.random.randint(k_act, (B, 1), 0, ACTION_DIM)          # (B, 1) discrete
    memory = 0.1 * jax.random.normal(k_mem, (B, LATENT_DIM), dtype=jnp.float32)
    next_memory_mask = (jax.random.uniform(k_mask, (B, LATENT_DIM)) > 0.5
                        ).astype(jnp.float32)
    # padding-correctness precondition (wi2 / gather table only cover ACTION_DIM rows)
    assert int(jnp.max(action)) < ACTION_DIM and int(jnp.min(action)) >= 0

    outs = latent_mdp_forward(obs, action, next_obs, memory, next_memory_mask,
                              p_slab, a_table)
    outs = jax.block_until_ready(outs)

    i_logits, z_hat_t1, mem_out, next_mem, z_t, z_t1 = outs
    assert i_logits.shape == (B, ACTION_DIM)
    assert z_hat_t1.shape == (B, LATENT_DIM)
    assert mem_out.shape == next_mem.shape == z_t.shape == z_t1.shape == (B, LATENT_DIM)

    # Validate against the pure-JAX reference (tolerance covers MXU f32 rounding).
    ref = reference_forward(obs, action, next_obs, memory, next_memory_mask, params)
    for got, want in zip(outs, ref):
        np.testing.assert_allclose(np.asarray(got), np.asarray(want),
                                   rtol=2e-2, atol=2e-2)

    print("KERNEL_OK")
</pallas_src>

<mosaic_0001>
module attributes {stable_mosaic.version = 11 : i64} {
  func.func @latent_mdp_kernel(%arg0: i32, %arg1: memref<5x128x32xf32, #tpu.memory_space<vmem>>, %arg2: memref<264x128xf32, #tpu.memory_space<vmem>>, %arg3: memref<128x256xf32, #tpu.memory_space<vmem>>) attributes {dimension_semantics = [#tpu.dimension_semantics<parallel>], iteration_bounds = array<i64: 2>, scalar_prefetch = 0 : i64, scratch_operands = 0 : i64, tpu.core_type = #tpu.core_type<tc>, window_params = [{transform_indices = @transform_0, window_bounds = array<i64: 5, 128, 32>}, {pipeline_mode = #tpu.pipeline_mode<synchronous>, transform_indices = @transform_1, window_bounds = array<i64: 264, 128>}, {transform_indices = @transform_2, window_bounds = array<i64: 128, 256>}]} {
    %c0 = arith.constant 0 : index
    %c0_0 = arith.constant 0 : index
    %c0_1 = arith.constant 0 : index
    %0 = vector.load %arg1[%c0, %c0_0, %c0_1] : memref<5x128x32xf32, #tpu.memory_space<vmem>>, vector<2x128x32xf32>
    %1 = vector.shape_cast %0 : vector<2x128x32xf32> to vector<256x32xf32>
    %c2 = arith.constant 2 : index
    %c0_2 = arith.constant 0 : index
    %c0_3 = arith.constant 0 : index
    %2 = vector.load %arg1[%c2, %c0_2, %c0_3] : memref<5x128x32xf32, #tpu.memory_space<vmem>>, vector<1x128x32xf32>
    %3 = vector.shape_cast %2 : vector<1x128x32xf32> to vector<128x32xf32>
    %c3 = arith.constant 3 : index
    %c0_4 = arith.constant 0 : index
    %c0_5 = arith.constant 0 : index
    %4 = vector.load %arg1[%c3, %c0_4, %c0_5] : memref<5x128x32xf32, #tpu.memory_space<vmem>>, vector<1x128x32xf32>
    %5 = vector.shape_cast %4 : vector<1x128x32xf32> to vector<128x32xf32>
    %c4 = arith.constant 4 : index
    %c0_6 = arith.constant 0 : index
    %c0_7 = arith.constant 0 : index
    %6 = vector.load %arg1[%c4, %c0_6, %c0_7] : memref<5x128x32xf32, #tpu.memory_space<vmem>>, vector<1x128x32xf32>
    %7 = vector.shape_cast %6 : vector<1x128x32xf32> to vector<128x32xf32>
    %c0_8 = arith.constant 0 : index
    %c0_9 = arith.constant 0 : index
    %8 = vector.load %arg2[%c0_8, %c0_9] : memref<264x128xf32, #tpu.memory_space<vmem>>, vector<32x64xf32>
    %c32 = arith.constant 32 : index
    %c0_10 = arith.constant 0 : index
    %9 = vector.load %arg2[%c32, %c0_10] : memref<264x128xf32, #tpu.memory_space<vmem>>, vector<64x32xf32>
    %c96 = arith.constant 96 : index
    %c0_11 = arith.constant 0 : index
    %10 = vector.load %arg2[%c96, %c0_11] : memref<264x128xf32, #tpu.memory_space<vmem>>, vector<32x32xf32>
    %c128 = arith.constant 128 : index
    %c0_12 = arith.constant 0 : index
    %11 = vector.load %arg2[%c128, %c0_12] : memref<264x128xf32, #tpu.memory_space<vmem>>, vector<32x96xf32>
    %c160 = arith.constant 160 : index
    %c0_13 = arith.constant 0 : index
    %12 = vector.load %arg2[%c160, %c0_13] : memref<264x128xf32, #tpu.memory_space<vmem>>, vector<32x64xf32>
    %c192 = arith.constant 192 : index
    %c0_14 = arith.constant 0 : index
    %13 = vector.load %arg2[%c192, %c0_14] : memref<264x128xf32, #tpu.memory_space<vmem>>, vector<64x32xf32>
    %c256 = arith.constant 256 : index
    %c0_15 = arith.constant 0 : index
    %14 = vector.load %arg2[%c256, %c0_15] : memref<264x128xf32, #tpu.memory_space<vmem>>, vector<1x64xf32>
    %c257 = arith.constant 257 : index
    %c0_16 = arith.constant 0 : index
    %15 = vector.load %arg2[%c257, %c0_16] : memref<264x128xf32, #tpu.memory_space<vmem>>, vector<1x32xf32>
    %c258 = arith.constant 258 : index
    %c0_17 = arith.constant 0 : index
    %16 = vector.load %arg2[%c258, %c0_17] : memref<264x128xf32, #tpu.memory_space<vmem>>, vector<1x64xf32>
    %c259 = arith.constant 259 : index
    %c0_18 = arith.constant 0 : index
    %17 = vector.load %arg2[%c259, %c0_18] : memref<264x128xf32, #tpu.memory_space<vmem>>, vector<1x32xf32>
    %cst = arith.constant dense<0.000000e+00> : vector<256x64xf32>
    %18 = tpu.matmul %1, %8, %cst {dimension_numbers = #tpu.dot_dimension_numbers<[1], [0], [0], [1], [0, 0, 1, 1], [], []>} : vector<256x32xf32>, vector<32x64xf32>, vector<256x64xf32> -> vector<256x64xf32>
    %19 = vector.broadcast %14 : vector<1x64xf32> to vector<256x64xf32>
    %20 = arith.addf %18, %19 : vector<256x64xf32>
    %cst_19 = arith.constant 0.000000e+00 : f32
    %21 = vector.broadcast %cst_19 : f32 to vector<256x64xf32>
    %22 = arith.maximumf %20, %21 : vector<256x64xf32>
    %cst_20 = arith.constant dense<0.000000e+00> : vector<256x32xf32>
    %23 = tpu.matmul %22, %9, %cst_20 {dimension_numbers = #tpu.dot_dimension_numbers<[1], [0], [0], [1], [0, 0, 1, 1], [], []>} : vector<256x64xf32>, vector<64x32xf32>, vector<256x32xf32> -> vector<256x32xf32>
    %24 = vector.broadcast %15 : vector<1x32xf32> to vector<256x32xf32>
    %25 = arith.addf %23, %24 : vector<256x32xf32>
    %26 = vector.extract_strided_slice %25 {offsets = [0, 0], sizes = [128, 32], strides = [1, 1]} : vector<256x32xf32> to vector<128x32xf32>
    %27 = vector.extract_strided_slice %25 {offsets = [128, 0], sizes = [128, 32], strides = [1, 1]} : vector<256x32xf32> to vector<128x32xf32>
    %cst_21 = arith.constant dense<0.000000e+00> : vector<128x32xf32>
    %28 = tpu.matmul %3, %10, %cst_21 {dimension_numbers = #tpu.dot_dimension_numbers<[1], [0], [0], [1], [0, 0, 1, 1], [], []>} : vector<128x32xf32>, vector<32x32xf32>, vector<128x32xf32> -> vector<128x32xf32>
    %29 = arith.addf %26, %28 : vector<128x32xf32>
    %30 = math.tanh %29 : vector<128x32xf32>
    %31 = arith.mulf %30, %5 : vector<128x32xf32>
    %cst_22 = arith.constant dense<0.000000e+00> : vector<128x32xf32>
    %32 = tpu.matmul %31, %10, %cst_22 {dimension_numbers = #tpu.dot_dimension_numbers<[1], [0], [0], [1], [0, 0, 1, 1], [], []>} : vector<128x32xf32>, vector<32x32xf32>, vector<128x32xf32> -> vector<128x32xf32>
    %33 = arith.addf %27, %32 : vector<128x32xf32>
    %34 = math.tanh %33 : vector<128x32xf32>
    %cst_23 = arith.constant dense<0.000000e+00> : vector<128x96xf32>
    %35 = tpu.matmul %29, %11, %cst_23 {dimension_numbers = #tpu.dot_dimension_numbers<[1], [0], [0], [1], [0, 0, 1, 1], [], []>} : vector<128x32xf32>, vector<32x96xf32>, vector<128x96xf32> -> vector<128x96xf32>
    %36 = vector.extract_strided_slice %35 {offsets = [0, 0], sizes = [128, 64], strides = [1, 1]} : vector<128x96xf32> to vector<128x64xf32>
    %cst_24 = arith.constant dense<0.000000e+00> : vector<128x64xf32>
    %37 = tpu.matmul %33, %12, %cst_24 {dimension_numbers = #tpu.dot_dimension_numbers<[1], [0], [0], [1], [0, 0, 1, 1], [], []>} : vector<128x32xf32>, vector<32x64xf32>, vector<128x64xf32> -> vector<128x64xf32>
    %38 = arith.addf %36, %37 : vector<128x64xf32>
    %39 = vector.broadcast %16 : vector<1x64xf32> to vector<128x64xf32>
    %40 = arith.addf %38, %39 : vector<128x64xf32>
    %cst_25 = arith.constant 0.000000e+00 : f32
    %41 = vector.broadcast %cst_25 : f32 to vector<128x64xf32>
    %42 = arith.maximumf %40, %41 : vector<128x64xf32>
    %cst_26 = arith.constant dense<0.000000e+00> : vector<128x32xf32>
    %43 = tpu.matmul %42, %13, %cst_26 {dimension_numbers = #tpu.dot_dimension_numbers<[1], [0], [0], [1], [0, 0, 1, 1], [], []>} : vector<128x64xf32>, vector<64x32xf32>, vector<128x32xf32> -> vector<128x32xf32>
    %44 = vector.broadcast %17 : vector<1x32xf32> to vector<128x32xf32>
    %45 = arith.addf %43, %44 : vector<128x32xf32>
    %46 = vector.extract_strided_slice %35 {offsets = [0, 64], sizes = [128, 32], strides = [1, 1]} : vector<128x96xf32> to vector<128x32xf32>
    %47 = arith.addf %46, %7 : vector<128x32xf32>
    %cst_27 = arith.constant 0.000000e+00 : f32
    %48 = vector.broadcast %cst_27 : f32 to vector<128x64xf32>
    %49 = tpu.concatenate %45, %47, %30, %34, %29, %33, %48 in 1 : vector<128x32xf32>, vector<128x32xf32>, vector<128x32xf32>, vector<128x32xf32>, vector<128x32xf32>, vector<128x32xf32>, vector<128x64xf32> -> vector<128x256xf32>
    %c0_28 = arith.constant 0 : index
    %c0_29 = arith.constant 0 : index
    %50 = vector.load %arg3[%c0_28, %c0_29] : memref<128x256xf32, #tpu.memory_space<vmem>>, vector<128x256xf32>
    tpu.vector_store %arg3[%c0_28, %c0_29], %49 {strides = array<i32>} : memref<128x256xf32, #tpu.memory_space<vmem>>, vector<128x256xf32>,
    return
  }
  func.func @transform_0(%arg0: i32) -> (i32, i32, i32) {
    %c0_i32 = arith.constant 0 : i32
    %c0_i32_0 = arith.constant 0 : i32
    %c0_i32_1 = arith.constant 0 : i32
    return %c0_i32, %arg0, %c0_i32_0 : i32, i32, i32
  }
  func.func @transform_1(%arg0: i32) -> (i32, i32) {
    %c0_i32 = arith.constant 0 : i32
    %c0_i32_0 = arith.constant 0 : i32
    %c0_i32_1 = arith.constant 0 : i32
    return %c0_i32, %c0_i32_0 : i32, i32
  }
  func.func @transform_2(%arg0: i32) -> (i32, i32) {
    %c0_i32 = arith.constant 0 : i32
    %c0_i32_0 = arith.constant 0 : i32
    return %arg0, %c0_i32 : i32, i32
  }
}

</mosaic_0001>

<bundles_post_ra>
// kernel: latent_mdp_forward.1
= control target key start
LH: loop header
LB: loop body
LE: loop exit
PB: predicated region body
PF: predicated region fallthrough
CT: control target
= control target key end

     0   :  { %s3722_s9 = smov 0   ;;  %s3724_s10 = smov 0   ;;  %s4962_s0 = inlined_call_operand.vmem [shape: f32[5,256,32], index: 0, kind: input, shape index: {}]   ;;  %s4963_s1 = inlined_call_operand.vmem [shape: f32[264,128], index: 1, kind: input, shape index: {}]   ;;  %s4964_s2 = inlined_call_operand.vmem [shape: f32[256,256], index: 2, kind: output, shape index: {}]  }
   0x1   :  { %s3726_s11 = smov 0  }
   0x2 LB: > { %s2901_s12 = sadd.s32 4294967295, %s3702_s11   ;;  %s3739_s13 = sadd.s32 1, %s3702_s11   ;;  %s3702_s11 = sphi %s3726_s11, %s4981_s11   ;;  %s3698_s10 = sphi %s3724_s10, %s4980_s10   ;;  %s3694_s9 = sphi %s3722_s9, %s4979_s9  }
   0x3   : > { %s16_s14 = ssub.s32 %s3702_s11, %s3739_s13  ;;  %s19_s15 = sadd.s32 1, %s3698_s10 }
   0x4   : > { %p17_p0 = scmp.eq.s32.totalorder %s16_s14, 0  ;;  %p26_p1 = scmp.ne.s32.totalorder %s3698_s10, %s3694_s9 }
   0x5   : > { %p27_p2 = scmp.eq.s32.totalorder %s3702_s11, 0  ;;  %p2904_p4 = scmp.ge.s32.totalorder %s3702_s11, 2 }
   0x6   : > { %s3748_s16 = scalar_select %p17_p0, %s3698_s10, %s19_s15  }
   0x7   : > { %p28_p3 = por %p27_p2, %p26_p1  ;;  %102 = sbr.rel (%p2904_p4) target bundleno = 57 (0x39), region = 20 }
   0xc   : > { %105 = sbr.rel (!%p28_p3) target bundleno = 57 (0x39), region = 24  ;;  %s107_s17 = sand.u32 (%p28_p3), 1, %s3698_s10  }
   0xd   : > { %s3109_s18 = sshll.u32 (%p28_p3), %s3702_s11, 7  ;;  %s3587_s19 = smul.u32 (%p28_p3), 640, %s107_s17 }
   0xe   : > { %s3756_s22 = scalar_lea.vmem (%p28_p3), %s4962_s0, %s3109_s18 }
   0xf   : > { %v299_v0 = vld [vmem:[%s3756_s22] sm:$0xff] (%p28_p3)  ;;  %v301_v1 = vld [vmem:[%s3756_s22 + $0x8] sm:$0xff] (%p28_p3)  ;;  %v303_v2 = vld [vmem:[%s3756_s22 + $0x10] sm:$0xff] (%p28_p3)  ;;  %s3764_s23 = scalar_lea.vmem (%p28_p3), [#allocation2], %s3587_s19 }
  0x10   : > { %v305_v3 = vld [vmem:[%s3756_s22 + $0x18] sm:$0xff] (%p28_p3)  ;;  %v307_v4 = vld [vmem:[%s3756_s22 + $0x20] sm:$0xff] (%p28_p3)  ;;  %v309_v5 = vld [vmem:[%s3756_s22 + $0x28] sm:$0xff] (%p28_p3)  ;;  %300 = vst [vmem:[%s3764_s23] sm:$0xff] (%p28_p3), %v299_v0 }
  0x11   : > { %302 = vst [vmem:[%s3764_s23 + $0x8] sm:$0xff] %v301_v1  ;;  %304 = vst [vmem:[%s3764_s23 + $0x10] sm:$0xff] %v303_v2  ;;  %v311_v6 = vld [vmem:[%s3756_s22 + $0x30] sm:$0xff]  ;;  %v313_v7 = vld [vmem:[%s3756_s22 + $0x38] sm:$0xff] }
  0x12   : > { %306 = vst [vmem:[%s3764_s23 + $0x18] sm:$0xff] %v305_v3  ;;  %308 = vst [vmem:[%s3764_s23 + $0x20] sm:$0xff] %v307_v4  ;;  %v315_v8 = vld [vmem:[%s3756_s22 + $0x40] sm:$0xff]  ;;  %v317_v9 = vld [vmem:[%s3756_s22 + $0x48] sm:$0xff] }
  0x13   : > { %310 = vst [vmem:[%s3764_s23 + $0x28] sm:$0xff] %v309_v5  ;;  %312 = vst [vmem:[%s3764_s23 + $0x30] sm:$0xff] %v311_v6  ;;  %v319_v10 = vld [vmem:[%s3756_s22 + $0x50] sm:$0xff]  ;;  %v321_v11 = vld [vmem:[%s3756_s22 + $0x58] sm:$0xff] }
  0x14   : > { %314 = vst [vmem:[%s3764_s23 + $0x38] sm:$0xff] %v313_v7  ;;  %316 = vst [vmem:[%s3764_s23 + $0x40] sm:$0xff] %v315_v8  ;;  %v323_v12 = vld [vmem:[%s3756_s22 + $0x60] sm:$0xff]  ;;  %v325_v13 = vld [vmem:[%s3756_s22 + $0x68] sm:$0xff] }
  0x15   : > { %318 = vst [vmem:[%s3764_s23 + $0x48] sm:$0xff] %v317_v9  ;;  %320 = vst [vmem:[%s3764_s23 + $0x50] sm:$0xff] %v319_v10  ;;  %v327_v14 = vld [vmem:[%s3756_s22 + $0x70] sm:$0xff]  ;;  %v329_v15 = vld [vmem:[%s3756_s22 + $0x78] sm:$0xff] }
  0x16   : > { %322 = vst [vmem:[%s3764_s23 + $0x58] sm:$0xff] %v321_v11  ;;  %324 = vst [vmem:[%s3764_s23 + $0x60] sm:$0xff] %v323_v12  ;;  %v331_v16 = vld [vmem:[%s3756_s22 + $0x100] sm:$0xff]  ;;  %v333_v17 = vld [vmem:[%s3756_s22 + $0x108] sm:$0xff] }
  0x17   : > { %326 = vst [vmem:[%s3764_s23 + $0x68] sm:$0xff] %v325_v13  ;;  %328 = vst [vmem:[%s3764_s23 + $0x70] sm:$0xff] %v327_v14  ;;  %v335_v18 = vld [vmem:[%s3756_s22 + $0x110] sm:$0xff]  ;;  %v337_v19 = vld [vmem:[%s3756_s22 + $0x118] sm:$0xff] }
  0x18   : > { %330 = vst [vmem:[%s3764_s23 + $0x78] sm:$0xff] %v329_v15  ;;  %332 = vst [vmem:[%s3764_s23 + $0x80] sm:$0xff] %v331_v16  ;;  %v339_v20 = vld [vmem:[%s3756_s22 + $0x120] sm:$0xff]  ;;  %v341_v21 = vld [vmem:[%s3756_s22 + $0x128] sm:$0xff] }
  0x19   : > { %334 = vst [vmem:[%s3764_s23 + $0x88] sm:$0xff] %v333_v17  ;;  %336 = vst [vmem:[%s3764_s23 + $0x90] sm:$0xff] %v335_v18  ;;  %v343_v22 = vld [vmem:[%s3756_s22 + $0x130] sm:$0xff]  ;;  %v345_v23 = vld [vmem:[%s3756_s22 + $0x138] sm:$0xff] }
  0x1a   : > { %338 = vst [vmem:[%s3764_s23 + $0x98] sm:$0xff] %v337_v19  ;;  %340 = vst [vmem:[%s3764_s23 + $0xa0] sm:$0xff] %v339_v20  ;;  %v347_v24 = vld [vmem:[%s3756_s22 + $0x140] sm:$0xff]  ;;  %v349_v25 = vld [vmem:[%s3756_s22 + $0x148] sm:$0xff] }
  0x1b   : > { %342 = vst [vmem:[%s3764_s23 + $0xa8] sm:$0xff] %v341_v21  ;;  %344 = vst [vmem:[%s3764_s23 + $0xb0] sm:$0xff] %v343_v22  ;;  %v351_v26 = vld [vmem:[%s3756_s22 + $0x150] sm:$0xff]  ;;  %v353_v27 = vld [vmem:[%s3756_s22 + $0x158] sm:$0xff] }
  0x1c   : > { %346 = vst [vmem:[%s3764_s23 + $0xb8] sm:$0xff] %v345_v23  ;;  %348 = vst [vmem:[%s3764_s23 + $0xc0] sm:$0xff] %v347_v24  ;;  %v355_v28 = vld [vmem:[%s3756_s22 + $0x160] sm:$0xff]  ;;  %v357_v29 = vld [vmem:[%s3756_s22 + $0x168] sm:$0xff] }
  0x1d   : > { %350 = vst [vmem:[%s3764_s23 + $0xc8] sm:$0xff] %v349_v25  ;;  %352 = vst [vmem:[%s3764_s23 + $0xd0] sm:$0xff] %v351_v26  ;;  %v359_v30 = vld [vmem:[%s3756_s22 + $0x170] sm:$0xff]  ;;  %v361_v31 = vld [vmem:[%s3756_s22 + $0x178] sm:$0xff] }
  0x1e   : > { %354 = vst [vmem:[%s3764_s23 + $0xd8] sm:$0xff] %v353_v27  ;;  %356 = vst [vmem:[%s3764_s23 + $0xe0] sm:$0xff] %v355_v28  ;;  %v363_v32 = vld [vmem:[%s3756_s22 + $0x200] sm:$0xff]  ;;  %v365_v33 = vld [vmem:[%s3756_s22 + $0x208] sm:$0xff] }
  0x1f   : > { %358 = vst [vmem:[%s3764_s23 + $0xe8] sm:$0xff] %v357_v29  ;;  %360 = vst [vmem:[%s3764_s23 + $0xf0] sm:$0xff] %v359_v30  ;;  %v367_v34 = vld [vmem:[%s3756_s22 + $0x210] sm:$0xff]  ;;  %v369_v35 = vld [vmem:[%s3756_s22 + $0x218] sm:$0xff] }
  0x20   : > { %362 = vst [vmem:[%s3764_s23 + $0xf8] sm:$0xff] %v361_v31  ;;  %364 = vst [vmem:[%s3764_s23 + $0x100] sm:$0xff] %v363_v32  ;;  %v371_v36 = vld [vmem:[%s3756_s22 + $0x220] sm:$0xff]  ;;  %v373_v37 = vld [vmem:[%s3756_s22 + $0x228] sm:$0xff] }
  0x21   : > { %366 = vst [vmem:[%s3764_s23 + $0x108] sm:$0xff] %v365_v33  ;;  %368 = vst [vmem:[%s3764_s23 + $0x110] sm:$0xff] %v367_v34  ;;  %v375_v38 = vld [vmem:[%s3756_s22 + $0x230] sm:$0xff]  ;;  %v377_v39 = vld [vmem:[%s3756_s22 + $0x238] sm:$0xff] }
  0x22   : > { %370 = vst [vmem:[%s3764_s23 + $0x118] sm:$0xff] %v369_v35  ;;  %372 = vst [vmem:[%s3764_s23 + $0x120] sm:$0xff] %v371_v36  ;;  %v379_v40 = vld [vmem:[%s3756_s22 + $0x240] sm:$0xff]  ;;  %v381_v41 = vld [vmem:[%s3756_s22 + $0x248] sm:$0xff] }
  0x23   : > { %374 = vst [vmem:[%s3764_s23 + $0x128] sm:$0xff] %v373_v37  ;;  %376 = vst [vmem:[%s3764_s23 + $0x130] sm:$0xff] %v375_v38  ;;  %v383_v42 = vld [vmem:[%s3756_s22 + $0x250] sm:$0xff]  ;;  %v385_v43 = vld [vmem:[%s3756_s22 + $0x258] sm:$0xff] }
  0x24   : > { %378 = vst [vmem:[%s3764_s23 + $0x138] sm:$0xff] %v377_v39  ;;  %380 = vst [vmem:[%s3764_s23 + $0x140] sm:$0xff] %v379_v40  ;;  %v387_v44 = vld [vmem:[%s3756_s22 + $0x260] sm:$0xff]  ;;  %v389_v45 = vld [vmem:[%s3756_s22 + $0x268] sm:$0xff] }
  0x25   : > { %382 = vst [vmem:[%s3764_s23 + $0x148] sm:$0xff] %v381_v41  ;;  %384 = vst [vmem:[%s3764_s23 + $0x150] sm:$0xff] %v383_v42  ;;  %v391_v46 = vld [vmem:[%s3756_s22 + $0x270] sm:$0xff]  ;;  %v393_v47 = vld [vmem:[%s3756_s22 + $0x278] sm:$0xff] }
  0x26   : > { %386 = vst [vmem:[%s3764_s23 + $0x158] sm:$0xff] %v385_v43  ;;  %388 = vst [vmem:[%s3764_s23 + $0x160] sm:$0xff] %v387_v44  ;;  %v395_v48 = vld [vmem:[%s3756_s22 + $0x300] sm:$0xff]  ;;  %v397_v49 = vld [vmem:[%s3756_s22 + $0x308] sm:$0xff] }
  0x27   : > { %390 = vst [vmem:[%s3764_s23 + $0x168] sm:$0xff] %v389_v45  ;;  %392 = vst [vmem:[%s3764_s23 + $0x170] sm:$0xff] %v391_v46  ;;  %v399_v50 = vld [vmem:[%s3756_s22 + $0x310] sm:$0xff]  ;;  %v401_v51 = vld [vmem:[%s3756_s22 + $0x318] sm:$0xff] }
  0x28   : > { %394 = vst [vmem:[%s3764_s23 + $0x178] sm:$0xff] %v393_v47  ;;  %396 = vst [vmem:[%s3764_s23 + $0x180] sm:$0xff] %v395_v48  ;;  %v403_v52 = vld [vmem:[%s3756_s22 + $0x320] sm:$0xff]  ;;  %v405_v53 = vld [vmem:[%s3756_s22 + $0x328] sm:$0xff] }
  0x29   : > { %398 = vst [vmem:[%s3764_s23 + $0x188] sm:$0xff] %v397_v49  ;;  %400 = vst [vmem:[%s3764_s23 + $0x190] sm:$0xff] %v399_v50  ;;  %v407_v54 = vld [vmem:[%s3756_s22 + $0x330] sm:$0xff]  ;;  %v409_v55 = vld [vmem:[%s3756_s22 + $0x338] sm:$0xff] }
  0x2a   : > { %402 = vst [vmem:[%s3764_s23 + $0x198] sm:$0xff] %v401_v51  ;;  %404 = vst [vmem:[%s3764_s23 + $0x1a0] sm:$0xff] %v403_v52  ;;  %v411_v56 = vld [vmem:[%s3756_s22 + $0x340] sm:$0xff]  ;;  %v413_v57 = vld [vmem:[%s3756_s22 + $0x348] sm:$0xff] }
  0x2b   : > { %406 = vst [vmem:[%s3764_s23 + $0x1a8] sm:$0xff] %v405_v53  ;;  %408 = vst [vmem:[%s3764_s23 + $0x1b0] sm:$0xff] %v407_v54  ;;  %v415_v58 = vld [vmem:[%s3756_s22 + $0x350] sm:$0xff]  ;;  %v417_v59 = vld [vmem:[%s3756_s22 + $0x358] sm:$0xff] }
  0x2c   : > { %410 = vst [vmem:[%s3764_s23 + $0x1b8] sm:$0xff] %v409_v55  ;;  %412 = vst [vmem:[%s3764_s23 + $0x1c0] sm:$0xff] %v411_v56  ;;  %v419_v60 = vld [vmem:[%s3756_s22 + $0x360] sm:$0xff]  ;;  %v421_v61 = vld [vmem:[%s3756_s22 + $0x368] sm:$0xff] }
  0x2d   : > { %414 = vst [vmem:[%s3764_s23 + $0x1c8] sm:$0xff] %v413_v57  ;;  %416 = vst [vmem:[%s3764_s23 + $0x1d0] sm:$0xff] %v415_v58  ;;  %v423_v62 = vld [vmem:[%s3756_s22 + $0x370] sm:$0xff]  ;;  %v425_v63 = vld [vmem:[%s3756_s22 + $0x378] sm:$0xff] }
  0x2e   : > { %418 = vst [vmem:[%s3764_s23 + $0x1d8] sm:$0xff] %v417_v59  ;;  %420 = vst [vmem:[%s3764_s23 + $0x1e0] sm:$0xff] %v419_v60  ;;  %v427_v0 = vld [vmem:[%s3756_s22 + $0x400] sm:$0xff]  ;;  %v429_v1 = vld [vmem:[%s3756_s22 + $0x408] sm:$0xff] }
  0x2f   : > { %422 = vst [vmem:[%s3764_s23 + $0x1e8] sm:$0xff] %v421_v61  ;;  %424 = vst [vmem:[%s3764_s23 + $0x1f0] sm:$0xff] %v423_v62  ;;  %v431_v2 = vld [vmem:[%s3756_s22 + $0x410] sm:$0xff]  ;;  %v433_v3 = vld [vmem:[%s3756_s22 + $0x418] sm:$0xff] }
  0x30   : > { %426 = vst [vmem:[%s3764_s23 + $0x1f8] sm:$0xff] %v425_v63  ;;  %428 = vst [vmem:[%s3764_s23 + $0x200] sm:$0xff] %v427_v0  ;;  %v435_v4 = vld [vmem:[%s3756_s22 + $0x420] sm:$0xff]  ;;  %v437_v5 = vld [vmem:[%s3756_s22 + $0x428] sm:$0xff] }
  0x31   : > { %430 = vst [vmem:[%s3764_s23 + $0x208] sm:$0xff] %v429_v1  ;;  %432 = vst [vmem:[%s3764_s23 + $0x210] sm:$0xff] %v431_v2  ;;  %v439_v6 = vld [vmem:[%s3756_s22 + $0x430] sm:$0xff]  ;;  %v441_v7 = vld [vmem:[%s3756_s22 + $0x438] sm:$0xff] }
  0x32   : > { %434 = vst [vmem:[%s3764_s23 + $0x218] sm:$0xff] %v433_v3  ;;  %436 = vst [vmem:[%s3764_s23 + $0x220] sm:$0xff] %v435_v4  ;;  %v443_v8 = vld [vmem:[%s3756_s22 + $0x440] sm:$0xff]  ;;  %v445_v9 = vld [vmem:[%s3756_s22 + $0x448] sm:$0xff] }
  0x33   : > { %438 = vst [vmem:[%s3764_s23 + $0x228] sm:$0xff] %v437_v5  ;;  %440 = vst [vmem:[%s3764_s23 + $0x230] sm:$0xff] %v439_v6  ;;  %v447_v10 = vld [vmem:[%s3756_s22 + $0x450] sm:$0xff]  ;;  %v449_v11 = vld [vmem:[%s3756_s22 + $0x458] sm:$0xff] }
  0x34   : > { %442 = vst [vmem:[%s3764_s23 + $0x238] sm:$0xff] %v441_v7  ;;  %444 = vst [vmem:[%s3764_s23 + $0x240] sm:$0xff] %v443_v8  ;;  %v451_v12 = vld [vmem:[%s3756_s22 + $0x460] sm:$0xff]  ;;  %v453_v13 = vld [vmem:[%s3756_s22 + $0x468] sm:$0xff] }
  0x35   : > { %446 = vst [vmem:[%s3764_s23 + $0x248] sm:$0xff] %v445_v9  ;;  %448 = vst [vmem:[%s3764_s23 + $0x250] sm:$0xff] %v447_v10  ;;  %v455_v14 = vld [vmem:[%s3756_s22 + $0x470] sm:$0xff]  ;;  %v457_v15 = vld [vmem:[%s3756_s22 + $0x478] sm:$0xff] }
  0x36   : > { %450 = vst [vmem:[%s3764_s23 + $0x258] sm:$0xff] %v449_v11  ;;  %452 = vst [vmem:[%s3764_s23 + $0x260] sm:$0xff] %v451_v12 }
  0x37   : > { %454 = vst [vmem:[%s3764_s23 + $0x268] sm:$0xff] %v453_v13  ;;  %456 = vst [vmem:[%s3764_s23 + $0x270] sm:$0xff] %v455_v14 }
  0x38   : > { %458 = vst [vmem:[%s3764_s23 + $0x278] sm:$0xff] %v457_v15 }
  0x39 PF: > { %p2907_p5 = scmp.ge.s32.totalorder %s3702_s11, 1  ;;  %p463_p6 = scmp.lt.s32.totalorder %s3702_s11, 3 }
  0x3b   : > { %p464_p7 = pnand %p2907_p5, %p463_p6 }
  0x3d   : > { %467 = sbr.rel (%p464_p7) target bundleno = 1120 (0x460), region = 62 }
  0x42   : > { %v586_v16 = vld [vmem:[%s4963_s1 + $0x18] sm:$0xff]  ;;  %v585_v17 = vld [vmem:[%s4963_s1 + $0x10] sm:$0xff]  ;;  %s470_s28 = sand.u32 1, %s3694_s9   ;;  %v584_v18 = vld [vmem:[%s4963_s1 + $0x8] sm:$0xff]  ;;  %vm623_vm0 = vcmask 261120   ;;  %s3704_s9 = smov 64  }
  0x43   : > { %3291 = vmatprep.subr.mxu0 %v586_v16  ;;  %s3588_s29 = smul.u32 640, %s470_s28  ;;  %3579 = vmatprep.subr.mxu1 %v586_v16  ;;  %v583_v19 = vld [vmem:[%s4963_s1] sm:$0xff]  ;;  %v3943_v22 = vld [vmem:[%s4963_s1 + $0x78] sm:$0xff]  ;;  %v3949_v24 = vld [vmem:[%s4963_s1 + $0x70] sm:$0xff]  ;;  %vm981_vm1 = vcmask 523264   ;;  %s3706_s8 = smov 32  }
  0x44   : > { %3292 = vmatpush3.msra.mxu0 %v586_v16  ;;  %3583 = vmatpush3.msra.mxu1 %v586_v16  ;;  %v594_v25 = vld [vmem:[%s4963_s1 + $0x58] sm:$0xff]  ;;  %v3962_v27 = vld [vmem:[%s4963_s1 + $0x68] sm:$0xff]  ;;  %v593_v33 = vld [vmem:[%s4963_s1 + $0x50] sm:$0xff]  ;;  %s2908_s30 = sshll.u32 %s2901_s12, 4  ;;  %vm2756_vm2 = vcmask 785408  }
  0x45   : > { %3293 = vmatprep.subr.mxu0 %v585_v17  ;;  %3580 = vmatprep.subr.mxu1 %v585_v17  ;;  %s3935_s6 = scalar_lea.vmem [#allocation2], %s3588_s29  ;;  %v592_v36 = vld [vmem:[%s4963_s1 + $0x48] sm:$0xff]  ;;  %v591_v39 = vld [vmem:[%s4963_s1 + $0x40] sm:$0xff]  ;;  %v590_v45 = vld [vmem:[%s4963_s1 + $0x38] sm:$0xff]  ;;  %p494_p8 = scmp.lt.s32.totalorder %s2908_s30, 31 }
  0x46   : > { %3294 = vmatpush3.msra.mxu0 %v585_v17  ;;  %v500_v20 = vld [vmem:[%s3935_s6] sm:$0xff]  ;;  %3584 = vmatpush3.msra.mxu1 %v585_v17  ;;  %v501_v21 = vld [vmem:[%s3935_s6 + $0x8] sm:$0xff]  ;;  %v502_v23 = vld [vmem:[%s3935_s6 + $0x10] sm:$0xff] }
  0x47   : > { %3295 = vmatprep.subr.mxu0 %v584_v18  ;;  %3299 = vmatprep.mubr.msk.f32.mxu0 %vm623_vm0, %v500_v20  ;;  %v503_v26 = vld [vmem:[%s3935_s6 + $0x18] sm:$0xff]  ;;  %v504_v28 = vld [vmem:[%s3935_s6 + $0x20] sm:$0xff]  ;;  %v525_v30 = vld [vmem:[%s3935_s6 + $0xc8] sm:$0xff]  ;;  %s4983_s30 = smov (!%p494_p8, %s2908_s30), 31 }
  0x48   : > { %3296 = vmatpush3.msra.mxu0 %v584_v18  ;;  %3581 = vmatprep.subr.mxu1 %v584_v18  ;;  %v524_v29 = vld [vmem:[%s3935_s6 + $0xc0] sm:$0xff]  ;;  %v526_v31 = vld [vmem:[%s3935_s6 + $0xd0] sm:$0xff]  ;;  %v505_v32 = vld [vmem:[%s3935_s6 + $0x28] sm:$0xff]  ;;  %s3110_s3 = sshll.u32 %s4983_s30, 4 }
  0x49   : > { %3297 = vmatprep.subr.mxu0 %v583_v19  ;;  %3585 = vmatpush3.msra.mxu1 %v584_v18  ;;  %v506_v34 = vld [vmem:[%s3935_s6 + $0x30] sm:$0xff]  ;;  %v527_v35 = vld [vmem:[%s3935_s6 + $0xd8] sm:$0xff]  ;;  %v528_v37 = vld [vmem:[%s3935_s6 + $0xe0] sm:$0xff]  ;;  %s4680_s11 = scalar_lea.vmem %s4964_s2, %s3110_s3 }
  0x4a   : > { %3298 = vmatpush3.msra.mxu0 %v583_v19  ;;  %3582 = vmatprep.subr.mxu1 %v583_v19  ;;  %v507_v38 = vld [vmem:[%s3935_s6 + $0x38] sm:$0xff]  ;;  %v508_v40 = vld [vmem:[%s3935_s6 + $0x40] sm:$0xff]  ;;  %v529_v42 = vld [vmem:[%s3935_s6 + $0xe8] sm:$0xff] }
  0x4b   : > { %3300 = vmatmul.mubr.msk.f32.vlgmr.msra.gmra.mxu0 %vm623_vm0, %v501_v21  ;;  %3411 = vmatprep.subr.mxu0 %v3943_v22  ;;  %v3998_v41 = vld [vmem:[%s4963_s1 + $0x60] sm:$0xff]  ;;  %v530_v43 = vld [vmem:[%s3935_s6 + $0xf0] sm:$0xff]  ;;  %v509_v44 = vld [vmem:[%s3935_s6 + $0x48] sm:$0xff] }
  0x4c   : > { %3302 = vmatprep.mubr.msk.f32.mxu0 %vm623_vm0, %v502_v23  ;;  %3412 = vmatpush3.msra.mxu0 %v3943_v22  ;;  %v510_v46 = vld [vmem:[%s3935_s6 + $0x50] sm:$0xff]  ;;  %v531_v47 = vld [vmem:[%s3935_s6 + $0xf8] sm:$0xff]  ;;  %v512_v49 = vld [vmem:[%s3935_s6 + $0x60] sm:$0xff] }
  0x4d   : > { %3413 = vmatprep.subr.mxu0 %v3949_v24  ;;  %3586 = vmatpush3.msra.mxu1 %v583_v19  ;;  %v511_v48 = vld [vmem:[%s3935_s6 + $0x58] sm:$0xff]  ;;  %v513_v50 = vld [vmem:[%s3935_s6 + $0x68] sm:$0xff]  ;;  %v514_v51 = vld [vmem:[%s3935_s6 + $0x70] sm:$0xff] }
  0x4e   : > { %3414 = vmatpush3.msra.mxu0 %v3949_v24  ;;  %3347 = vmatprep.subr.mxu1 %v594_v25  ;;  %v515_v52 = vld [vmem:[%s3935_s6 + $0x78] sm:$0xff]  ;;  %v516_v53 = vld [vmem:[%s3935_s6 + $0x80] sm:$0xff]  ;;  %v517_v54 = vld [vmem:[%s3935_s6 + $0x88] sm:$0xff] }
  0x4f   : > { %3303 = vmatmul.mubr.msk.f32.gmra.mxu0 %vm623_vm0, %v503_v26  ;;  %3415 = vmatprep.subr.mxu0 %v3962_v27  ;;  %v518_v55 = vld [vmem:[%s3935_s6 + $0x90] sm:$0xff]  ;;  %v519_v56 = vld [vmem:[%s3935_s6 + $0x98] sm:$0xff]  ;;  %v520_v57 = vld [vmem:[%s3935_s6 + $0xa0] sm:$0xff] }
  0x50   : > { %3305 = vmatprep.mubr.msk.f32.mxu0 %vm623_vm0, %v504_v28  ;;  %3335 = vmatprep.mubr.msk.f32.mxu1 %vm623_vm0, %v524_v29  ;;  %v521_v58 = vld [vmem:[%s3935_s6 + $0xa8] sm:$0xff]  ;;  %v522_v59 = vld [vmem:[%s3935_s6 + $0xb0] sm:$0xff]  ;;  %v523_v60 = vld [vmem:[%s3935_s6 + $0xb8] sm:$0xff] }
  0x51   : > { %3416 = vmatpush3.msra.mxu0 %v3962_v27  ;;  %3336 = vmatmul.mubr.msk.f32.vlgmr.msra.gmra.mxu1 %vm623_vm0, %v525_v30  ;;  %v589_v61 = vld [vmem:[%s4963_s1 + $0x30] sm:$0xff]  ;;  %v588_v62 = vld [vmem:[%s4963_s1 + $0x28] sm:$0xff]  ;;  %v587_v63 = vld [vmem:[%s4963_s1 + $0x20] sm:$0xff] }
  0x52   : > { %3338 = vmatprep.mubr.msk.f32.mxu1 %vm623_vm0, %v526_v31  ;;  %3348 = vmatpush3.msra.mxu1 %v594_v25  ;;  %v2911_v0 = vld [vmem:[%s3935_s6 + $0x100] sm:$0xff]  ;;  %v2912_v1 = vld [vmem:[%s3935_s6 + $0x108] sm:$0xff]  ;;  %v2913_v2 = vld [vmem:[%s3935_s6 + $0x110] sm:$0xff] }
  0x53   : > { %3306 = vmatmul.mubr.msk.f32.gmra.mxu0 %vm623_vm0, %v505_v32  ;;  %3349 = vmatprep.subr.mxu1 %v593_v33  ;;  %v2914_v3 = vld [vmem:[%s3935_s6 + $0x118] sm:$0xff]  ;;  %v2915_v4 = vld [vmem:[%s3935_s6 + $0x120] sm:$0xff]  ;;  %v2916_v5 = vld [vmem:[%s3935_s6 + $0x128] sm:$0xff] }
  0x54   : > { %3308 = vmatprep.mubr.msk.f32.mxu0 %vm623_vm0, %v506_v34  ;;  %3350 = vmatpush3.msra.mxu1 %v593_v33  ;;  %v2917_v6 = vld [vmem:[%s3935_s6 + $0x130] sm:$0xff]  ;;  %v2918_v7 = vld [vmem:[%s3935_s6 + $0x138] sm:$0xff]  ;;  %v2919_v8 = vld [vmem:[%s3935_s6 + $0x140] sm:$0xff] }
  0x55   : > { %3339 = vmatmul.mubr.msk.f32.gmra.mxu1 %vm623_vm0, %v527_v35  ;;  %3351 = vmatprep.subr.mxu1 %v592_v36  ;;  %v2920_v9 = vld [vmem:[%s3935_s6 + $0x148] sm:$0xff]  ;;  %v2921_v10 = vld [vmem:[%s3935_s6 + $0x150] sm:$0xff]  ;;  %v2922_v11 = vld [vmem:[%s3935_s6 + $0x158] sm:$0xff] }
  0x56   : > { %3341 = vmatprep.mubr.msk.f32.mxu1 %vm623_vm0, %v528_v37  ;;  %3352 = vmatpush3.msra.mxu1 %v592_v36  ;;  %v2923_v12 = vld [vmem:[%s3935_s6 + $0x160] sm:$0xff]  ;;  %v2924_v13 = vld [vmem:[%s3935_s6 + $0x168] sm:$0xff]  ;;  %v2925_v14 = vld [vmem:[%s3935_s6 + $0x170] sm:$0xff] }
  0x57   : > { %3309 = vmatmul.mubr.msk.f32.gmra.mxu0 %vm623_vm0, %v507_v38  ;;  %3353 = vmatprep.subr.mxu1 %v591_v39  ;;  %v2926_v15 = vld [vmem:[%s3935_s6 + $0x178] sm:$0xff]  ;;  %v2945_v16 = vld [vmem:[%s3935_s6 + $0x210] sm:$0xff]  ;;  %v2943_v17 = vld [vmem:[%s3935_s6 + $0x200] sm:$0xff] }
  0x58   : > { %3311 = vmatprep.mubr.msk.f32.mxu0 %vm623_vm0, %v508_v40  ;;  %3417 = vmatprep.subr.mxu0 %v3998_v41  ;;  %v2946_v18 = vld [vmem:[%s3935_s6 + $0x218] sm:$0xff]  ;;  %v2944_v19 = vld [vmem:[%s3935_s6 + $0x208] sm:$0xff]  ;;  %v2947_v21 = vld [vmem:[%s3935_s6 + $0x220] sm:$0xff] }
  0x59   : > { %3342 = vmatmul.mubr.msk.f32.gmra.mxu1 %vm623_vm0, %v529_v42  ;;  %3418 = vmatpush3.msra.mxu0 %v3998_v41  ;;  %v2948_v20 = vld [vmem:[%s3935_s6 + $0x228] sm:$0xff]  ;;  %v2950_v23 = vld [vmem:[%s3935_s6 + $0x238] sm:$0xff]  ;;  %v4103_v25 = vld [vmem:[%s4963_s1 + $0x100] ss:$0 sm:$0xff] }
  0x5a   : > { %3344 = vmatprep.mubr.msk.f32.mxu1 %vm623_vm0, %v530_v43  ;;  %3354 = vmatpush3.msra.mxu1 %v591_v39 }
  0x5b   : > { %3312 = vmatmul.mubr.msk.f32.gmra.mxu0 %vm623_vm0, %v509_v44  ;;  %3355 = vmatprep.subr.mxu1 %v590_v45 }
  0x5c   : > { %3314 = vmatprep.mubr.msk.f32.mxu0 %vm623_vm0, %v510_v46  ;;  %3356 = vmatpush3.msra.mxu1 %v590_v45 }
  0x5d   : > { %3345 = vmatmul.mubr.msk.f32.gmra.mxu1 %vm623_vm0, %v531_v47  ;;  %3357 = vmatprep.subr.mxu1 %v589_v61 }
  0x5e   : > { %3358 = vmatpush3.msra.mxu1 %v589_v61  ;;  %2424 = vrot.lane.b32.xlu1 %v2945_v16, %s3704_s9 }
  0x5f   : > { %3315 = vmatmul.mubr.msk.f32.gmra.mxu0 %vm623_vm0, %v511_v48  ;;  %3359 = vmatprep.subr.mxu1 %v588_v62 }
  0x60   : > { %3317 = vmatprep.mubr.msk.f32.mxu0 %vm623_vm0, %v512_v49  ;;  %3360 = vmatpush3.msra.mxu1 %v588_v62 }
  0x61   : > { %3361 = vmatprep.subr.mxu1 %v587_v63  ;;  %2420 = vrot.lane.b32.xlu0 %v2943_v17, %s3704_s9 }
  0x62   : > { %3362 = vmatpush3.msra.mxu1 %v587_v63  ;;  %2426 = vrot.lane.b32.xlu1 %v2946_v18, %s3704_s9 }
  0x63   : > { %3318 = vmatmul.mubr.msk.f32.gmra.mxu0 %vm623_vm0, %v513_v50  ;;  %3443 = vmatprep.subr.mxu1 %v3943_v22 }
  0x64   : > { %3320 = vmatprep.mubr.msk.f32.mxu0 %vm623_vm0, %v514_v51 }
  0x65   : > { %2422 = vrot.lane.b32.xlu0 %v2944_v19, %s3704_s9 }
  0x66   : > { %2430 = vrot.lane.b32.xlu1 %v2948_v20, %s3704_s9 }
  0x67   : > { %3321 = vmatmul.mubr.msk.f32.gmra.mxu0 %vm623_vm0, %v515_v52 }
  0x68   : > { %3323 = vmatprep.mubr.msk.f32.mxu0 %vm623_vm0, %v516_v53 }
  0x69   : > { %2428 = vrot.lane.b32.xlu0 %v2947_v21, %s3704_s9 }
  0x6a   : > { %2434 = vrot.lane.b32.xlu1 %v2950_v23, %s3704_s9 }
  0x6b   : > { %3324 = vmatmul.mubr.msk.f32.gmra.mxu0 %vm623_vm0, %v517_v54 }
  0x6c   : > { %3326 = vmatprep.mubr.msk.f32.mxu0 %vm623_vm0, %v518_v55 }
  0x6f   : > { %3327 = vmatmul.mubr.msk.f32.gmra.mxu0 %vm623_vm0, %v519_v56 }
  0x70   : > { %3329 = vmatprep.mubr.msk.f32.mxu0 %vm623_vm0, %v520_v57 }
  0x73   : > { %3330 = vmatmul.mubr.msk.f32.gmra.mxu0 %vm623_vm0, %v521_v58 }
  0x74   : > { %3332 = vmatprep.mubr.msk.f32.mxu0 %vm623_vm0, %v522_v59 }
  0x77   : > { %3333 = vmatmul.mubr.msk.f32.gmra.mxu0 %vm623_vm0, %v523_v60 }
  0x78   : > { %3419 = vmatprep.mubr.msk.f32.mxu0 %vm623_vm0, %v2911_v0 }
  0x7b   : > { %3420 = vmatmul.mubr.msk.f32.vlgmr.msra.gmra.mxu0 %vm623_vm0, %v2912_v1 }
  0x7c   : > { %3422 = vmatprep.mubr.msk.f32.mxu0 %vm623_vm0, %v2913_v2 }
  0x7f   : > { %3423 = vmatmul.mubr.msk.f32.gmra.mxu0 %vm623_vm0, %v2914_v3 }
  0x80   : > { %3425 = vmatprep.mubr.msk.f32.mxu0 %vm623_vm0, %v2915_v4 }
  0x83   : > { %3426 = vmatmul.mubr.msk.f32.gmra.mxu0 %vm623_vm0, %v2916_v5 }
  0x84   : > { %3428 = vmatprep.mubr.msk.f32.mxu0 %vm623_vm0, %v2917_v6 }
  0x87   : > { %3429 = vmatmul.mubr.msk.f32.gmra.mxu0 %vm623_vm0, %v2918_v7 }
  0x88   : > { %3431 = vmatprep.mubr.msk.f32.mxu0 %vm623_vm0, %v2919_v8 }
  0x8b   : > { %3432 = vmatmul.mubr.msk.f32.gmra.mxu0 %vm623_vm0, %v2920_v9 }
  0x8c   : > { %3434 = vmatprep.mubr.msk.f32.mxu0 %vm623_vm0, %v2921_v10 }
  0x8f   : > { %3435 = vmatmul.mubr.msk.f32.gmra.mxu0 %vm623_vm0, %v2922_v11 }
  0x90   : > { %3437 = vmatprep.mubr.msk.f32.mxu0 %vm623_vm0, %v2923_v12 }
  0x93   : > { %3438 = vmatmul.mubr.msk.f32.gmra.mxu0 %vm623_vm0, %v2924_v13 }
  0x94   : > { %3440 = vmatprep.mubr.msk.f32.mxu0 %vm623_vm0, %v2925_v14 }
  0x97   : > { %3441 = vmatmul.mubr.msk.f32.gmra.mxu0 %vm623_vm0, %v2926_v15 }
 0x10b   : > { %v3301_v26 = vpop.f32.mrf.mxu0 }
 0x10c   : > { %v792_v28 = vadd.f32 %v3301_v26, %v4103_v25 }
 0x10d   : > { %v786_v29 = vpop.f32.mrf.mxu0 }
 0x10e   : > { %v787_v30 = vadd.f32 %v4103_v25, %v786_v29  ;;  %v946_v33 = vmax.f32 %v792_v28, 0.0 }
 0x10f   : > { %v3304_v31 = vpop.f32.mrf.mxu0 }
 0x110   : > { %v945_v32 = vmax.f32 %v787_v30, 0.0  ;;  %v802_v34 = vadd.f32 %v3304_v31, %v4103_v25 }
 0x111   : > { %v796_v35 = vpop.f32.mrf.mxu0  ;;  %v3337_v63 = vpop.f32.mrf.mxu1 }
 0x112   : > { %v797_v36 = vadd.f32 %v4103_v25, %v796_v35  ;;  %3363 = vmatprep.mubr.msk.f32.mxu1 %vm981_vm1, %v945_v32  ;;  %v948_v39 = vmax.f32 %v802_v34, 0.0 }
 0x113   : > { %v3307_v37 = vpop.f32.mrf.mxu0  ;;  %3364 = vmatmul.mubr.msk.f32.vlgmr.msra.gmra.mxu1 %vm981_vm1, %v946_v33  ;;  %v906_v6 = vpop.f32.mrf.mxu1 }
 0x114   : > { %v947_v38 = vmax.f32 %v797_v36, 0.0  ;;  %3444 = vmatpush3.msra.mxu1 %v3943_v22  ;;  %v812_v40 = vadd.f32 %v3307_v37, %v4103_v25  ;;  %v907_v37 = vadd.f32 %v4103_v25, %v906_v6 }
 0x115   : > { %v806_v42 = vpop.f32.mrf.mxu0  ;;  %3445 = vmatprep.subr.mxu1 %v3949_v24  ;;  %v3340_v13 = vpop.f32.mrf.mxu1 }
 0x116   : > { %v807_v43 = vadd.f32 %v4103_v25, %v806_v42  ;;  %3366 = vmatprep.mubr.msk.f32.mxu1 %vm981_vm1, %v947_v38  ;;  %3446 = vmatpush3.msra.mxu1 %v3949_v24  ;;  %v950_v22 = vmax.f32 %v812_v40, 0.0 }
 0x117   : > { %v3310_v44 = vpop.f32.mrf.mxu0  ;;  %3367 = vmatmul.mubr.msk.f32.gmra.mxu1 %vm981_vm1, %v948_v39  ;;  %3447 = vmatprep.subr.mxu1 %v3962_v27  ;;  %v916_v20 = vpop.f32.mrf.mxu1 }
 0x118   : > { %v949_v45 = vmax.f32 %v807_v43, 0.0  ;;  %3448 = vmatpush3.msra.mxu1 %v3962_v27  ;;  %v822_v46 = vadd.f32 %v3310_v44, %v4103_v25  ;;  %v912_v43 = vadd.f32 %v3337_v63, %v4103_v25  ;;  %v2954_v63 = vld [vmem:[%s3935_s6 + $0x258] sm:$0xff] }
 0x119   : > { %v816_v47 = vpop.f32.mrf.mxu0  ;;  %3449 = vmatprep.subr.mxu1 %v3998_v41  ;;  %v3343_v31 = vpop.f32.mrf.mxu1 }
 0x11a   : > { %v817_v48 = vadd.f32 %v4103_v25, %v816_v47  ;;  %3369 = vmatprep.mubr.msk.f32.mxu1 %vm981_vm1, %v949_v45  ;;  %3450 = vmatpush3.msra.mxu1 %v3998_v41  ;;  %v952_v50 = vmax.f32 %v822_v46, 0.0  ;;  %v969_v45 = vmax.f32 %v907_v37, 0.0  ;;  %v970_v47 = vmax.f32 %v912_v43, 0.0 }
 0x11b   : > { %v3313_v24 = vpop.f32.mrf.mxu0  ;;  %3370 = vmatmul.mubr.msk.f32.gmra.mxu1 %vm981_vm1, %v950_v22  ;;  %v926_v39 = vpop.f32.mrf.mxu1  ;;  %v917_v22 = vadd.f32 %v4103_v25, %v916_v20 }
 0x11c   : > { %v951_v49 = vmax.f32 %v817_v48, 0.0  ;;  %v832_v51 = vadd.f32 %v3313_v24, %v4103_v25  ;;  %v922_v48 = vadd.f32 %v3340_v13, %v4103_v25 }
 0x11d   : > { %v826_v27 = vpop.f32.mrf.mxu0  ;;  %v3346_v46 = vpop.f32.mrf.mxu1  ;;  %v971_v24 = vmax.f32 %v917_v22, 0.0 }
 0x11e   : > { %v827_v52 = vadd.f32 %v4103_v25, %v826_v27  ;;  %3372 = vmatprep.mubr.msk.f32.mxu1 %vm981_vm1, %v951_v49  ;;  %v954_v55 = vmax.f32 %v832_v51, 0.0  ;;  %v927_v49 = vadd.f32 %v4103_v25, %v926_v39  ;;  %v972_v51 = vmax.f32 %v922_v48, 0.0 }
 0x11f   : > { %v3316_v53 = vpop.f32.mrf.mxu0  ;;  %3373 = vmatmul.mubr.msk.f32.gmra.mxu1 %vm981_vm1, %v952_v50  ;;  %v936_v50 = vpop.f32.mrf.mxu1  ;;  %v932_v27 = vadd.f32 %v3343_v31, %v4103_v25 }
 0x120   : > { %v953_v54 = vmax.f32 %v827_v52, 0.0  ;;  %v842_v56 = vadd.f32 %v3316_v53, %v4103_v25  ;;  %v973_v52 = vmax.f32 %v927_v49, 0.0  ;;  %v937_v53 = vadd.f32 %v4103_v25, %v936_v50  ;;  %v2927_v49 = vld [vmem:[%s3935_s6 + $0x180] sm:$0xff] }
 0x121   : > { %v836_v41 = vpop.f32.mrf.mxu0 }
 0x122   : > { %v837_v57 = vadd.f32 %v4103_v25, %v836_v41  ;;  %3375 = vmatprep.mubr.msk.f32.mxu1 %vm981_vm1, %v953_v54  ;;  %v956_v60 = vmax.f32 %v842_v56, 0.0  ;;  %v974_v54 = vmax.f32 %v932_v27, 0.0  ;;  %v975_v56 = vmax.f32 %v937_v53, 0.0  ;;  %v2928_v27 = vld [vmem:[%s3935_s6 + $0x188] sm:$0xff] }
 0x123   : > { %v3319_v58 = vpop.f32.mrf.mxu0  ;;  %3376 = vmatmul.mubr.msk.f32.gmra.mxu1 %vm981_vm1, %v954_v55  ;;  %v942_v55 = vadd.f32 %v3346_v46, %v4103_v25 }
 0x124   : > { %v955_v59 = vmax.f32 %v837_v57, 0.0  ;;  %v852_v61 = vadd.f32 %v3319_v58, %v4103_v25  ;;  %v602_v57 = vld [vmem:[%s4963_s1 + $0x98] sm:$0xff]  ;;  %v601_v58 = vld [vmem:[%s4963_s1 + $0x90] sm:$0xff] }
 0x125   : > { %v846_v62 = vpop.f32.mrf.mxu0  ;;  %v976_v41 = vmax.f32 %v942_v55, 0.0  ;;  %3475 = vmatprep.subr.mxu0 %v602_v57 }
 0x126   : > { %v847_v0 = vadd.f32 %v4103_v25, %v846_v62  ;;  %3378 = vmatprep.mubr.msk.f32.mxu1 %vm981_vm1, %v955_v59  ;;  %v958_v3 = vmax.f32 %v852_v61, 0.0  ;;  %3476 = vmatpush3.msra.mxu0 %v602_v57  ;;  %v2952_v59 = vld [vmem:[%s3935_s6 + $0x248] sm:$0xff]  ;;  %v2951_v61 = vld [vmem:[%s3935_s6 + $0x240] sm:$0xff] }
 0x127   : > { %v3322_v1 = vpop.f32.mrf.mxu0  ;;  %3379 = vmatmul.mubr.msk.f32.gmra.mxu1 %vm981_vm1, %v956_v60  ;;  %3477 = vmatprep.subr.mxu0 %v601_v58  ;;  %v600_v60 = vld [vmem:[%s4963_s1 + $0x88] sm:$0xff]  ;;  %v599_v62 = vld [vmem:[%s4963_s1 + $0x80] sm:$0xff] }
 0x128   : > { %v957_v2 = vmax.f32 %v847_v0, 0.0  ;;  %v862_v4 = vadd.f32 %v3322_v1, %v4103_v25  ;;  %2438 = vrot.lane.b32.xlu1 %v2952_v59, %s3704_s9  ;;  %3478 = vmatpush3.msra.mxu0 %v601_v58  ;;  %v2953_v0 = vld [vmem:[%s3935_s6 + $0x250] sm:$0xff]  ;;  %v2956_v1 = vld [vmem:[%s3935_s6 + $0x268] sm:$0xff] }
 0x129   : > { %v856_v5 = vpop.f32.mrf.mxu0  ;;  %3479 = vmatprep.subr.mxu0 %v600_v60  ;;  %v2929_v59 = vld [vmem:[%s3935_s6 + $0x190] sm:$0xff] }
 0x12a   : > { %v857_v7 = vadd.f32 %v4103_v25, %v856_v5  ;;  %3381 = vmatprep.mubr.msk.f32.mxu1 %vm981_vm1, %v957_v2  ;;  %v960_v11 = vmax.f32 %v862_v4, 0.0  ;;  %3480 = vmatpush3.msra.mxu0 %v600_v60  ;;  %v2955_v2 = vld [vmem:[%s3935_s6 + $0x260] sm:$0xff]  ;;  %v2957_v4 = vld [vmem:[%s3935_s6 + $0x270] sm:$0xff] }
 0x12b   : > { %3382 = vmatmul.mubr.msk.f32.gmra.mxu1 %vm981_vm1, %v958_v3  ;;  %v3325_v8 = vpop.f32.mrf.mxu0  ;;  %3481 = vmatprep.subr.mxu0 %v599_v62  ;;  %v2958_v3 = vld [vmem:[%s3935_s6 + $0x278] sm:$0xff] }
 0x12c   : > { %v959_v9 = vmax.f32 %v857_v7, 0.0  ;;  %v872_v10 = vadd.f32 %v3325_v8, %v4103_v25  ;;  %2442 = vrot.lane.b32.xlu1 %v2954_v63, %s3704_s9  ;;  %3482 = vmatpush3.msra.mxu0 %v599_v62  ;;  %v2930_v62 = vld [vmem:[%s3935_s6 + $0x198] sm:$0xff] }
 0x12d   : > { %v866_v12 = vpop.f32.mrf.mxu0 }
 0x12e   : > { %3384 = vmatprep.mubr.msk.f32.mxu1 %vm981_vm1, %v959_v9  ;;  %v867_v14 = vadd.f32 %v4103_v25, %v866_v12  ;;  %v962_v15 = vmax.f32 %v872_v10, 0.0  ;;  %v4209_v12 = vld [vmem:[%s4963_s1 + $0x101] ss:$0 sm:$0xff] }
 0x12f   : > { %3385 = vmatmul.mubr.msk.f32.gmra.mxu1 %vm981_vm1, %v960_v11  ;;  %v3328_v16 = vpop.f32.mrf.mxu0 }
 0x130   : > { %v961_v17 = vmax.f32 %v867_v14, 0.0  ;;  %v882_v18 = vadd.f32 %v3328_v16, %v4103_v25  ;;  %2446 = vrot.lane.b32.xlu1 %v2956_v1, %s3704_s9 }
 0x131   : > { %v876_v19 = vpop.f32.mrf.mxu0 }
 0x132   : > { %v877_v21 = vadd.f32 %v4103_v25, %v876_v19  ;;  %3387 = vmatprep.mubr.msk.f32.mxu1 %vm981_vm1, %v961_v17  ;;  %v964_v23 = vmax.f32 %v882_v18, 0.0 }
 0x133   : > { %v3331_v26 = vpop.f32.mrf.mxu0  ;;  %3388 = vmatmul.mubr.msk.f32.gmra.mxu1 %vm981_vm1, %v962_v15 }
 0x134   : > { %v963_v28 = vmax.f32 %v877_v21, 0.0  ;;  %v892_v29 = vadd.f32 %v3331_v26, %v4103_v25  ;;  %2450 = vrot.lane.b32.xlu1 %v2958_v3, %s3704_s9 }
 0x135   : > { %v886_v30 = vpop.f32.mrf.mxu0 }
 0x136   : > { %v887_v32 = vadd.f32 %v4103_v25, %v886_v30  ;;  %3390 = vmatprep.mubr.msk.f32.mxu1 %vm981_vm1, %v963_v28  ;;  %v966_v33 = vmax.f32 %v892_v29, 0.0 }
 0x137   : > { %v3334_v34 = vpop.f32.mrf.mxu0  ;;  %3391 = vmatmul.mubr.msk.f32.gmra.mxu1 %vm981_vm1, %v964_v23 }
 0x138   : > { %v965_v35 = vmax.f32 %v887_v32, 0.0  ;;  %v902_v36 = vadd.f32 %v3334_v34, %v4103_v25 }
 0x139   : > { %v896_v38 = vpop.f32.mrf.mxu0 }
 0x13a   : > { %v897_v40 = vadd.f32 %v4103_v25, %v896_v38  ;;  %3393 = vmatprep.mubr.msk.f32.mxu1 %vm981_vm1, %v965_v35  ;;  %v968_v42 = vmax.f32 %v902_v36, 0.0  ;;  %v2949_v25 = vld [vmem:[%s3935_s6 + $0x230] sm:$0xff] }
 0x13b   : > { %3394 = vmatmul.mubr.msk.f32.gmra.mxu1 %vm981_vm1, %v966_v33  ;;  %2432 = vrot.lane.b32.xlu0 %v2949_v25, %s3704_s9  ;;  %v3421_v5 = vpop.f32.mrf.mxu0 }
 0x13c   : > { %v967_v44 = vmax.f32 %v897_v40, 0.0 }
 0x13d   : > { %v1417_v6 = vpop.f32.mrf.mxu0 }
 0x13e   : > { %3396 = vmatprep.mubr.msk.f32.mxu1 %vm981_vm1, %v967_v44 }
 0x13f   : > { %3397 = vmatmul.mubr.msk.f32.gmra.mxu1 %vm981_vm1, %v968_v42  ;;  %2436 = vrot.lane.b32.xlu0 %v2951_v61, %s3704_s9  ;;  %v3424_v7 = vpop.f32.mrf.mxu0 }
 0x140   : > { %3399 = vmatprep.mubr.msk.f32.mxu1 %vm981_vm1, %v969_v45 }
 0x141   : > { %v1427_v8 = vpop.f32.mrf.mxu0 }
 0x143   : > { %3400 = vmatmul.mubr.msk.f32.gmra.mxu1 %vm981_vm1, %v970_v47  ;;  %2440 = vrot.lane.b32.xlu0 %v2953_v0, %s3704_s9  ;;  %v3427_v9 = vpop.f32.mrf.mxu0 }
 0x144   : > { %3402 = vmatprep.mubr.msk.f32.mxu1 %vm981_vm1, %v971_v24 }
 0x145   : > { %v1437_v10 = vpop.f32.mrf.mxu0 }
 0x147   : > { %3403 = vmatmul.mubr.msk.f32.gmra.mxu1 %vm981_vm1, %v972_v51  ;;  %2444 = vrot.lane.b32.xlu0 %v2955_v2, %s3704_s9  ;;  %v3430_v11 = vpop.f32.mrf.mxu0 }
 0x148   : > { %3405 = vmatprep.mubr.msk.f32.mxu1 %vm981_vm1, %v973_v52 }
 0x149   : > { %v1447_v14 = vpop.f32.mrf.mxu0 }
 0x14b   : > { %3406 = vmatmul.mubr.msk.f32.gmra.mxu1 %vm981_vm1, %v974_v54  ;;  %2448 = vrot.lane.b32.xlu0 %v2957_v4, %s3704_s9  ;;  %v3433_v20 = vpop.f32.mrf.mxu0 }
 0x14c   : > { %3408 = vmatprep.mubr.msk.f32.mxu1 %vm981_vm1, %v975_v56 }
 0x14d   : > { %v1457_v31 = vpop.f32.mrf.mxu0 }
 0x14f   : > { %3409 = vmatmul.mubr.msk.f32.gmra.mxu1 %vm981_vm1, %v976_v41  ;;  %v3436_v38 = vpop.f32.mrf.mxu0 }
 0x151   : > { %v1467_v22 = vpop.f32.mrf.mxu0 }
 0x153   : > { %v3439_v54 = vpop.f32.mrf.mxu0 }
 0x155   : > { %v1477_v1 = vpop.f32.mrf.mxu0 }
 0x1d3   : > { %v3365_v13 = vpop.f32.mrf.mxu1 }
 0x1d4   : > { %v1150_v15 = vadd.f32 %v3365_v13, %v4209_v12 }
 0x1d5   : > { %v1144_v16 = vpop.f32.mrf.mxu1 }
 0x1d6   : > { %v4212_v17 = vadd.f32 %v3421_v5, %v1150_v15  ;;  %v1145_v18 = vadd.f32 %v4209_v12, %v1144_v16  ;;  %v3442_v15 = vpop.f32.mrf.mxu0 }
 0x1d7   : > { %v3368_v19 = vpop.f32.mrf.mxu1 }
 0x1d8   : > { %3616 = vtanh.f32 %v4212_v17  ;;  %v4216_v21 = vadd.f32 %v1417_v6, %v1145_v18  ;;  %v1160_v23 = vadd.f32 %v3368_v19, %v4209_v12 }
 0x1d9   : > { %v1154_v26 = vpop.f32.mrf.mxu1 }
 0x1da   : > { %3618 = vtanh.f32 %v4216_v21  ;;  %v4220_v28 = vadd.f32 %v3424_v7, %v1160_v23  ;;  %v1155_v29 = vadd.f32 %v4209_v12, %v1154_v26  ;;  %3483 = vmatprep.mubr.msk.f32.mxu0 %vm623_vm0, %v4216_v21 }
 0x1db   : > { %v3371_v30 = vpop.f32.mrf.mxu1  ;;  %3484 = vmatmul.mubr.msk.f32.vlgmr.msra.gmra.mxu0 %vm623_vm0, %v4212_v17 }
 0x1dc   : > { %3620 = vtanh.f32 %v4220_v28  ;;  %v4228_v32 = vadd.f32 %v1427_v8, %v1155_v29  ;;  %v1170_v33 = vadd.f32 %v3371_v30, %v4209_v12  ;;  %v2931_v8 = vld [vmem:[%s3935_s6 + $0x1a0] sm:$0xff]  ;;  %v2933_v29 = vld [vmem:[%s3935_s6 + $0x1b0] sm:$0xff] }
 0x1dd   : > { %v1164_v34 = vpop.f32.mrf.mxu1 }
 0x1de   : > { %3622 = vtanh.f32 %v4228_v32  ;;  %v4232_v35 = vadd.f32 %v3427_v9, %v1170_v33  ;;  %v1165_v36 = vadd.f32 %v4209_v12, %v1164_v34  ;;  %3486 = vmatprep.mubr.msk.f32.mxu0 %vm623_vm0, %v4228_v32  ;;  %v2934_v33 = vld [vmem:[%s3935_s6 + $0x1b8] sm:$0xff] }
 0x1df   : > { %v3374_v37 = vpop.f32.mrf.mxu1  ;;  %3487 = vmatmul.mubr.msk.f32.gmra.mxu0 %vm623_vm0, %v4220_v28 }
 0x1e0   : > { %3624 = vtanh.f32 %v4232_v35  ;;  %v4240_v39 = vadd.f32 %v1437_v10, %v1165_v36  ;;  %v1180_v40 = vadd.f32 %v3374_v37, %v4209_v12  ;;  %v1487_v36 = vpop.f32.mrf.mxu0 }
 0x1e1   : > { %v1174_v42 = vpop.f32.mrf.mxu1 }
 0x1e2   : > { %3626 = vtanh.f32 %v4240_v39  ;;  %v4244_v43 = vadd.f32 %v3430_v11, %v1180_v40  ;;  %v1175_v44 = vadd.f32 %v4209_v12, %v1174_v42  ;;  %3489 = vmatprep.mubr.msk.f32.mxu0 %vm623_vm0, %v4240_v39  ;;  %v2932_v11 = vld [vmem:[%s3935_s6 + $0x1a8] sm:$0xff] }
 0x1e3   : > { %v3377_v45 = vpop.f32.mrf.mxu1  ;;  %3490 = vmatmul.mubr.msk.f32.gmra.mxu0 %vm623_vm0, %v4232_v35 }
 0x1e4   : > { %3628 = vtanh.f32 %v4244_v43  ;;  %v4252_v46 = vadd.f32 %v1447_v14, %v1175_v44  ;;  %v1190_v47 = vadd.f32 %v3377_v45, %v4209_v12  ;;  %v2935_v44 = vld [vmem:[%s3935_s6 + $0x1c0] sm:$0xff]  ;;  %v2936_v45 = vld [vmem:[%s3935_s6 + $0x1c8] sm:$0xff] }
 0x1e5   : > { %v3617_v48 = vpop.eup %3616  ;;  %v1184_v24 = vpop.f32.mrf.mxu1 }
 0x1e6   : > { %3630 = vtanh.f32 %v4252_v46  ;;  %v4257_v50 = vadd.f32 %v3433_v20, %v1190_v47  ;;  %v1185_v51 = vadd.f32 %v4209_v12, %v1184_v24  ;;  %2566 = vrot.lane.b32.xlu1 %v3617_v48, %s3704_s9  ;;  %3492 = vmatprep.mubr.msk.f32.mxu0 %vm623_vm0, %v4252_v46  ;;  %v1529_v58 = vmul.f32 %v3617_v48, %v2928_v27  ;;  %v2938_v27 = vld [vmem:[%s3935_s6 + $0x1d8] sm:$0xff] }
 0x1e7   : > { %v3619_v52 = vpop.eup %3618  ;;  %v3380_v53 = vpop.f32.mrf.mxu1  ;;  %3493 = vmatmul.mubr.msk.f32.gmra.mxu0 %vm623_vm0, %v4244_v43 }
 0x1e8   : > { %3632 = vtanh.f32 %v4257_v50  ;;  %v4267_v55 = vadd.f32 %v1457_v31, %v1185_v51  ;;  %v1200_v56 = vadd.f32 %v3380_v53, %v4209_v12  ;;  %2564 = vrot.lane.b32.xlu0 %v3619_v52, %s3704_s9  ;;  %v1528_v41 = vmul.f32 %v3619_v52, %v2927_v49  ;;  %v2937_v51 = vld [vmem:[%s3935_s6 + $0x1d0] sm:$0xff] }
 0x1e9   : > { %v3621_v57 = vpop.eup %3620  ;;  %v1194_v25 = vpop.f32.mrf.mxu1  ;;  %v605_v52 = vld [vmem:[%s4963_s1 + $0xb0] sm:$0xff] }
 0x1ea   : > { %3634 = vtanh.f32 %v4267_v55  ;;  %v4273_v60 = vadd.f32 %v3436_v38, %v1200_v56  ;;  %v1195_v61 = vadd.f32 %v4209_v12, %v1194_v25  ;;  %2570 = vrot.lane.b32.xlu1 %v3621_v57, %s3704_s9  ;;  %3451 = vmatprep.mubr.msk.f32.mxu1 %vm623_vm0, %v1528_v41  ;;  %v1531_v7 = vmul.f32 %v3621_v57, %v2930_v62  ;;  %v2939_v57 = vld [vmem:[%s3935_s6 + $0x1e0] sm:$0xff]  ;;  %v2940_v25 = vld [vmem:[%s3935_s6 + $0x1e8] sm:$0xff] }
 0x1eb   : > { %v3623_v63 = vpop.eup %3622  ;;  %3495 = vmatprep.mubr.msk.f32.mxu0 %vm623_vm0, %v4267_v55  ;;  %v3383_v0 = vpop.f32.mrf.mxu1  ;;  %3452 = vmatmul.mubr.msk.f32.vlgmr.msra.gmra.mxu1 %vm623_vm0, %v1529_v58 }
 0x1ec   : > { %3636 = vtanh.f32 %v4273_v60  ;;  %v4283_v2 = vadd.f32 %v1467_v22, %v1195_v61  ;;  %v1210_v3 = vadd.f32 %v3383_v0, %v4209_v12  ;;  %3496 = vmatmul.mubr.msk.f32.gmra.mxu0 %vm623_vm0, %v4257_v50  ;;  %2568 = vrot.lane.b32.xlu0 %v3623_v63, %s3704_s9  ;;  %v1530_v4 = vmul.f32 %v3623_v63, %v2929_v59  ;;  %v606_v22 = vld [vmem:[%s4963_s1 + $0xb8] sm:$0xff]  ;;  %v2941_v63 = vld [vmem:[%s3935_s6 + $0x1f0] sm:$0xff] }
 0x1ed   : > { %v3625_v5 = vpop.eup %3624  ;;  %v1204_v6 = vpop.f32.mrf.mxu1  ;;  %3507 = vmatprep.subr.mxu1 %v606_v22  ;;  %v2942_v0 = vld [vmem:[%s3935_s6 + $0x1f8] sm:$0xff]  ;;  %s3705_s6 = smov 96  }
 0x1ee   : > { %3638 = vtanh.f32 %v4283_v2  ;;  %v4291_v9 = vadd.f32 %v3439_v54, %v1210_v3  ;;  %v1205_v10 = vadd.f32 %v4209_v12, %v1204_v6  ;;  %2574 = vrot.lane.b32.xlu1 %v3625_v5, %s3704_s9  ;;  %3454 = vmatprep.mubr.msk.f32.mxu1 %vm623_vm0, %v1530_v4  ;;  %v1533_v26 = vmul.f32 %v3625_v5, %v2932_v11  ;;  %v604_v5 = vld [vmem:[%s4963_s1 + $0xa8] sm:$0xff]  ;;  %v603_v6 = vld [vmem:[%s4963_s1 + $0xa0] sm:$0xff] }
 0x1ef   : > { %v3627_v13 = vpop.eup %3626  ;;  %3498 = vmatprep.mubr.msk.f32.mxu0 %vm623_vm0, %v4283_v2  ;;  %v3386_v14 = vpop.f32.mrf.mxu1  ;;  %3455 = vmatmul.mubr.msk.f32.gmra.mxu1 %vm623_vm0, %v1531_v7 }
 0x1f0   : > { %3640 = vtanh.f32 %v4291_v9  ;;  %v4301_v16 = vadd.f32 %v1477_v1, %v1205_v10  ;;  %v1220_v18 = vadd.f32 %v3386_v14, %v4209_v12  ;;  %3499 = vmatmul.mubr.msk.f32.gmra.mxu0 %vm623_vm0, %v4273_v60  ;;  %2572 = vrot.lane.b32.xlu0 %v3627_v13, %s3704_s9  ;;  %v1532_v19 = vmul.f32 %v3627_v13, %v2931_v8 }
 0x1f1   : > { %v3629_v20 = vpop.eup %3628  ;;  %v1214_v23 = vpop.f32.mrf.mxu1  ;;  %3508 = vmatpush3.msra.mxu1 %v606_v22 }
 0x1f2   : > { %3642 = vtanh.f32 %v4301_v16  ;;  %v4309_v30 = vadd.f32 %v3442_v15, %v1220_v18  ;;  %v1215_v31 = vadd.f32 %v4209_v12, %v1214_v23  ;;  %2578 = vrot.lane.b32.xlu1 %v3629_v20, %s3704_s9  ;;  %3457 = vmatprep.mubr.msk.f32.mxu1 %vm623_vm0, %v1532_v19  ;;  %v1535_v42 = vmul.f32 %v3629_v20, %v2934_v33  ;;  %v2425_v23 = vpop.permute.xlu1 %2424 }
 0x1f3   : > { %v3631_v34 = vpop.eup %3630  ;;  %3501 = vmatprep.mubr.msk.f32.mxu0 %vm623_vm0, %v4301_v16  ;;  %3458 = vmatmul.mubr.msk.f32.gmra.mxu1 %vm623_vm0, %v1533_v26  ;;  %v3389_v7 = vpop.f32.mrf.mxu1 }
 0x1f4   : > { %3644 = vtanh.f32 %v4309_v30  ;;  %v4319_v37 = vadd.f32 %v1487_v36, %v1215_v31  ;;  %3502 = vmatmul.mubr.msk.f32.gmra.mxu0 %vm623_vm0, %v4291_v9  ;;  %2576 = vrot.lane.b32.xlu0 %v3631_v34, %s3704_s9  ;;  %v1534_v38 = vmul.f32 %v3631_v34, %v2933_v29  ;;  %v2421_v26 = vpop.permute.xlu0 %2420 }
 0x1f5   : > { %v3633_v40 = vpop.eup %3632  ;;  %3509 = vmatprep.subr.mxu1 %v605_v52  ;;  %v1224_v8 = vpop.f32.mrf.mxu1 }
 0x1f6   : > { %3646 = vtanh.f32 %v4319_v37  ;;  %2582 = vrot.lane.b32.xlu1 %v3633_v40, %s3704_s9  ;;  %3460 = vmatprep.mubr.msk.f32.mxu1 %vm623_vm0, %v1534_v38  ;;  %v1537_v49 = vmul.f32 %v3633_v40, %v2936_v45  ;;  %v2427_v33 = vpop.permute.xlu1 %2426 }
 0x1f7   : > { %v3635_v47 = vpop.eup %3634  ;;  %3504 = vmatprep.mubr.msk.f32.mxu0 %vm623_vm0, %v4319_v37  ;;  %3461 = vmatmul.mubr.msk.f32.gmra.mxu1 %vm623_vm0, %v1535_v42  ;;  %v4367_v10 = vpop.f32.mrf.mxu1 }
 0x1f8   : > { %3505 = vmatmul.mubr.msk.f32.gmra.mxu0 %vm623_vm0, %v4309_v30  ;;  %2580 = vrot.lane.b32.xlu0 %v3635_v47, %s3704_s9  ;;  %v1536_v48 = vmul.f32 %v3635_v47, %v2935_v44  ;;  %v2423_v34 = vpop.permute.xlu0 %2422 }
 0x1f9   : > { %v3637_v24 = vpop.eup %3636  ;;  %3510 = vmatpush3.msra.mxu1 %v605_v52  ;;  %v1234_v11 = vpop.f32.mrf.mxu1 }
 0x1fa   : > { %2586 = vrot.lane.b32.xlu1 %v3637_v24, %s3704_s9  ;;  %3463 = vmatprep.mubr.msk.f32.mxu1 %vm623_vm0, %v1536_v48  ;;  %v1539_v41 = vmul.f32 %v3637_v24, %v2938_v27  ;;  %v2431_v22 = vpop.permute.xlu1 %2430 }
 0x1fb   : > { %v3639_v53 = vpop.eup %3638  ;;  %3464 = vmatmul.mubr.msk.f32.gmra.mxu1 %vm623_vm0, %v1537_v49  ;;  %3511 = vmatprep.subr.mxu1 %v604_v5  ;;  %v4369_v13 = vpop.f32.mrf.mxu1 }
 0x1fc   : > { %2584 = vrot.lane.b32.xlu0 %v3639_v53, %s3704_s9  ;;  %v1538_v54 = vmul.f32 %v3639_v53, %v2937_v51  ;;  %3512 = vmatpush3.msra.mxu1 %v604_v5  ;;  %v2429_v49 = vpop.permute.xlu0 %2428 }
 0x1fd   : > { %v3641_v56 = vpop.eup %3640  ;;  %3513 = vmatprep.subr.mxu1 %v603_v6  ;;  %v4371_v14 = vpop.f32.mrf.mxu1 }
 0x1fe   : > { %2590 = vrot.lane.b32.xlu1 %v3641_v56, %s3704_s9  ;;  %3466 = vmatprep.mubr.msk.f32.mxu1 %vm623_vm0, %v1538_v54  ;;  %v1541_v62 = vmul.f32 %v3641_v56, %v2940_v25  ;;  %v2435_v56 = vpop.permute.xlu1 %2434 }
 0x1ff   : > { %v3643_v58 = vpop.eup %3642  ;;  %3467 = vmatmul.mubr.msk.f32.gmra.mxu1 %vm623_vm0, %v1539_v41  ;;  %v4373_v15 = vpop.f32.mrf.mxu1 }
 0x200   : > { %2588 = vrot.lane.b32.xlu0 %v3643_v58, %s3704_s9  ;;  %v1540_v59 = vmul.f32 %v3643_v58, %v2939_v57  ;;  %3514 = vmatpush3.msra.mxu1 %v603_v6  ;;  %v2433_v25 = vpop.permute.xlu0 %2432 }
 0x201   : > { %v3645_v61 = vpop.eup %3644  ;;  %v4375_v18 = vpop.f32.mrf.mxu1 }
 0x202   : > { %2594 = vrot.lane.b32.xlu1 %v3645_v61, %s3704_s9  ;;  %3469 = vmatprep.mubr.msk.f32.mxu1 %vm623_vm0, %v1540_v59  ;;  %v1543_v4 = vmul.f32 %v3645_v61, %v2942_v0  ;;  %v2439_v0 = vpop.permute.xlu1 %2438 }
 0x203   : > { %v3647_v1 = vpop.eup %3646  ;;  %3470 = vmatmul.mubr.msk.f32.gmra.mxu1 %vm623_vm0, %v1541_v62  ;;  %v4377_v19 = vpop.f32.mrf.mxu1 }
 0x204   : > { %2592 = vrot.lane.b32.xlu0 %v3647_v1, %s3704_s9  ;;  %v1542_v3 = vmul.f32 %v3647_v1, %v2941_v63  ;;  %v1225_v1 = vadd.f32 %v4209_v12, %v1224_v8 }
 0x205   : > { %v4379_v20 = vpop.f32.mrf.mxu1 }
 0x206   : > { %3472 = vmatprep.mubr.msk.f32.mxu1 %vm623_vm0, %v1542_v3 }
 0x207   : > { %3473 = vmatmul.mubr.msk.f32.gmra.mxu1 %vm623_vm0, %v1543_v4  ;;  %v4381_v29 = vpop.f32.mrf.mxu1  ;;  %v1230_v4 = vadd.f32 %v3389_v7, %v4209_v12  ;;  %v1240_v7 = vadd.f32 %v4367_v10, %v4209_v12  ;;  %v1250_v10 = vadd.f32 %v4369_v13, %v4209_v12  ;;  %v1255_v13 = vadd.f32 %v4209_v12, %v4375_v18 }
 0x209   : > { %v4383_v31 = vpop.f32.mrf.mxu1 }
 0x20b   : > { %v4388_v40 = vpop.f32.mrf.mxu1 }
 0x20d   : > { %v4398_v48 = vpop.f32.mrf.mxu1 }
 0x20f   : > { %v4408_v53 = vpop.f32.mrf.mxu1 }
 0x211   : > { %v4418_v59 = vpop.f32.mrf.mxu1 }
 0x29b   : > { %v4385_v36 = vpop.f32.mrf.mxu0 }
 0x29c   : > { %v2469_v38 = vadd.f32 %v4385_v36, %v2423_v34 }
 0x29d   : > { %v4390_v42 = vpop.f32.mrf.mxu0 }
 0x29e   : > { %v2468_v44 = vadd.f32 %v2421_v26, %v4390_v42  ;;  %2502 = vrot.lane.b32.xlu1 %v2469_v38, %s3705_s6 }
 0x29f   : > { %v4394_v45 = vpop.f32.mrf.mxu0 }
 0x2a0   : > { %v2471_v47 = vadd.f32 %v4394_v45, %v2427_v33  ;;  %2500 = vrot.lane.b32.xlu0 %v2468_v44, %s3705_s6  ;;  %v1235_v44 = vadd.f32 %v4209_v12, %v1234_v11 }
 0x2a1   : > { %v4400_v24 = vpop.f32.mrf.mxu0 }
 0x2a2   : > { %v2470_v51 = vadd.f32 %v2425_v23, %v4400_v24  ;;  %2506 = vrot.lane.b32.xlu1 %v2471_v47, %s3705_s6  ;;  %v2437_v23 = vpop.permute.xlu0 %2436 }
 0x2a3   : > { %v4404_v27 = vpop.f32.mrf.mxu0 }
 0x2a4   : > { %v2473_v52 = vadd.f32 %v4404_v27, %v2431_v22  ;;  %2504 = vrot.lane.b32.xlu0 %v2470_v51, %s3705_s6 }
 0x2a5   : > { %v4410_v54 = vpop.f32.mrf.mxu0 }
 0x2a6   : > { %v2472_v41 = vadd.f32 %v2429_v49, %v4410_v54  ;;  %2510 = vrot.lane.b32.xlu1 %v2473_v52, %s3705_s6  ;;  %v2443_v52 = vpop.permute.xlu1 %2442 }
 0x2a7   : > { %v4414_v57 = vpop.f32.mrf.mxu0 }
 0x2a8   : > { %v2475_v58 = vadd.f32 %v4414_v57, %v2435_v56  ;;  %2508 = vrot.lane.b32.xlu0 %v2472_v41, %s3705_s6  ;;  %v1245_v56 = vadd.f32 %v4209_v12, %v4371_v14 }
 0x2a9   : > { %v4420_v61 = vpop.f32.mrf.mxu0 }
 0x2aa   : > { %v2474_v62 = vadd.f32 %v2433_v25, %v4420_v61  ;;  %2514 = vrot.lane.b32.xlu1 %v2475_v58, %s3705_s6 }
 0x2ab   : > { %v3453_v63 = vpop.f32.mrf.mxu1 }
 0x2ac   : > { %v4425_v3 = vpop.f32.mrf.mxu0  ;;  %2512 = vrot.lane.b32.xlu0 %v2474_v62, %s3705_s6  ;;  %v1738_v34 = vadd.f32 %v3453_v63, %v1230_v4  ;;  %v2441_v62 = vpop.permute.xlu0 %2440 }
 0x2ad   : > { %v2477_v5 = vadd.f32 %v4425_v3, %v2439_v0  ;;  %v1658_v6 = vpop.f32.mrf.mxu1 }
 0x2ae   : > { %v4430_v26 = vadd.f32 %v1658_v6, %v1225_v1  ;;  %v4432_v33 = vpop.f32.mrf.mxu0  ;;  %3648 = vtanh.f32 %v1738_v34 }
 0x2af   : > { %v2476_v38 = vadd.f32 %v2437_v23, %v4432_v33  ;;  %2518 = vrot.lane.b32.xlu1 %v2477_v5, %s3705_s6  ;;  %v3456_v8 = vpop.f32.mrf.mxu1  ;;  %v1260_v5 = vadd.f32 %v4373_v15, %v4209_v12  ;;  %v1270_v15 = vadd.f32 %v4377_v19, %v4209_v12  ;;  %v1275_v19 = vadd.f32 %v4209_v12, %v4383_v31 }
 0x2b0   : > { %v4437_v22 = vpop.f32.mrf.mxu0  ;;  %3515 = vmatprep.mubr.msk.f32.mxu1 %vm623_vm0, %v4430_v26  ;;  %v4447_v51 = vadd.f32 %v3456_v8, %v1240_v7  ;;  %v2447_v8 = vpop.permute.xlu1 %2446  ;;  %3650 = vtanh.f32 %v4430_v26 }
 0x2b1   : > { %2516 = vrot.lane.b32.xlu0 %v2476_v38, %s3705_s6  ;;  %v1668_v47 = vpop.f32.mrf.mxu1  ;;  %3516 = vmatmul.mubr.msk.f32.vlgmr.msra.gmra.mxu1 %vm623_vm0, %v1738_v34  ;;  %v2479_v25 = vadd.f32 %v4437_v22, %v2443_v52  ;;  %v2445_v52 = vpop.permute.xlu0 %2444 }
 0x2b2   : > { %v4445_v49 = vadd.f32 %v1668_v47, %v1235_v44  ;;  %v4452_v41 = vpop.f32.mrf.mxu0  ;;  %v1265_v44 = vadd.f32 %v4209_v12, %v4379_v20  ;;  %3652 = vtanh.f32 %v4447_v51 }
 0x2b3   : > { %2678 = vrot.lane.b32.xlu1 %v1738_v34, %s3706_s8  ;;  %v3459_v11 = vpop.f32.mrf.mxu1  ;;  %v2478_v14 = vadd.f32 %v2441_v62, %v4452_v41  ;;  %v1280_v62 = vadd.f32 %v4381_v29, %v4209_v12  ;;  %v1285_v29 = vadd.f32 %v4209_v12, %v4398_v48 }
 0x2b4   : > { %3518 = vmatprep.mubr.msk.f32.mxu1 %vm623_vm0, %v4445_v49  ;;  %v4466_v0 = vadd.f32 %v3459_v11, %v1250_v10  ;;  %v4471_v4 = vpop.f32.mrf.mxu0  ;;  %3654 = vtanh.f32 %v4445_v49 }
 0x2b5   : > { %2676 = vrot.lane.b32.xlu0 %v4430_v26, %s3706_s8  ;;  %v1678_v58 = vpop.f32.mrf.mxu1  ;;  %3519 = vmatmul.mubr.msk.f32.gmra.mxu1 %vm623_vm0, %v4447_v51  ;;  %v2481_v47 = vadd.f32 %v4471_v4, %v2447_v8  ;;  %v2449_v8 = vpop.permute.xlu0 %2448 }
 0x2b6   : > { %v4463_v63 = vadd.f32 %v1678_v58, %v1245_v56  ;;  %v4488_v7 = vpop.f32.mrf.mxu0  ;;  %3656 = vtanh.f32 %v4466_v0 }
 0x2b7   : > { %2522 = vrot.lane.b32.xlu1 %v2479_v25, %s3705_s6  ;;  %v3462_v1 = vpop.f32.mrf.mxu1  ;;  %v2480_v20 = vadd.f32 %v2445_v52, %v4488_v7 }
 0x2b8   : > { %3521 = vmatprep.mubr.msk.f32.mxu1 %vm623_vm0, %v4463_v63  ;;  %v4482_v38 = vadd.f32 %v3462_v1, %v1260_v5  ;;  %v4507_v58 = vpop.f32.mrf.mxu0  ;;  %v2451_v5 = vpop.permute.xlu1 %2450  ;;  %3658 = vtanh.f32 %v4463_v63 }
 0x2b9   : > { %2520 = vrot.lane.b32.xlu0 %v2478_v14, %s3705_s6  ;;  %v1688_v6 = vpop.f32.mrf.mxu1  ;;  %3522 = vmatmul.mubr.msk.f32.gmra.mxu1 %vm623_vm0, %v4466_v0  ;;  %v2483_v26 = vadd.f32 %v4507_v58, %v2451_v5 }
 0x2ba   : > { %v4480_v23 = vadd.f32 %v1688_v6, %v1255_v13  ;;  %v4525_v34 = vpop.f32.mrf.mxu0  ;;  %v1290_v6 = vadd.f32 %v4388_v40, %v4209_v12  ;;  %v1295_v40 = vadd.f32 %v4209_v12, %v4418_v59  ;;  %3660 = vtanh.f32 %v4482_v38 }
 0x2bb   : > { %2682 = vrot.lane.b32.xlu1 %v4447_v51, %s3706_s8  ;;  %v3465_v18 = vpop.f32.mrf.mxu1  ;;  %v2482_v48 = vadd.f32 %v2449_v8, %v4525_v34  ;;  %v614_v51 = vld [vmem:[%s4963_s1 + $0xf8] sm:$0xff] }
 0x2bc   : > { %3524 = vmatprep.mubr.msk.f32.mxu1 %vm623_vm0, %v4480_v23  ;;  %v4502_v10 = vadd.f32 %v3465_v18, %v1270_v15  ;;  %3662 = vtanh.f32 %v4480_v23  ;;  %3539 = vmatprep.subr.mxu0 %v614_v51 }
 0x2bd   : > { %2680 = vrot.lane.b32.xlu0 %v4445_v49, %s3706_s8  ;;  %v1698_v11 = vpop.f32.mrf.mxu1  ;;  %3525 = vmatmul.mubr.msk.f32.gmra.mxu1 %vm623_vm0, %v4482_v38 }
 0x2be   : > { %v4499_v56 = vadd.f32 %v1698_v11, %v1265_v44  ;;  %v1300_v11 = vadd.f32 %v4408_v53, %v4209_v12  ;;  %v3649_v12 = vpop.eup %3648  ;;  %3540 = vmatpush3.msra.mxu0 %v614_v51  ;;  %3664 = vtanh.f32 %v4502_v10 }
 0x2bf   : > { %2526 = vrot.lane.b32.xlu1 %v2481_v47, %s3705_s6  ;;  %v3468_v25 = vpop.f32.mrf.mxu1  ;;  %v3651_v53 = vpop.eup %3650 }
 0x2c0   : > { %3527 = vmatprep.mubr.msk.f32.mxu1 %vm623_vm0, %v4499_v56  ;;  %v4519_v31 = vadd.f32 %v3468_v25, %v1280_v62  ;;  %v3653_v59 = vpop.eup %3652  ;;  %3666 = vtanh.f32 %v4499_v56  ;;  %v4591_v62 = vpop.permute.xlu0 %2564 }
 0x2c1   : > { %2524 = vrot.lane.b32.xlu0 %v2480_v20, %s3705_s6  ;;  %v1708_v14 = vpop.f32.mrf.mxu1  ;;  %3528 = vmatmul.mubr.msk.f32.gmra.mxu1 %vm623_vm0, %v4502_v10  ;;  %v3655_v49 = vpop.eup %3654 }
 0x2c2   : > { %v4516_v1 = vadd.f32 %v1708_v14, %v1275_v19  ;;  %v612_v19 = vld [vmem:[%s4963_s1 + $0xe8] sm:$0xff]  ;;  %3668 = vtanh.f32 %v4519_v31 }
 0x2c3   : > { %2686 = vrot.lane.b32.xlu1 %v4466_v0, %s3706_s8  ;;  %v3471_v13 = vpop.f32.mrf.mxu1 }
 0x2c4   : > { %3530 = vmatprep.mubr.msk.f32.mxu1 %vm623_vm0, %v4516_v1  ;;  %v1750_v15 = vadd.f32 %v3471_v13, %v1290_v6  ;;  %3670 = vtanh.f32 %v4516_v1  ;;  %v4607_v5 = vpop.permute.xlu0 %2568 }
 0x2c5   : > { %2684 = vrot.lane.b32.xlu0 %v4463_v63, %s3706_s8  ;;  %v1718_v18 = vpop.f32.mrf.mxu1  ;;  %3531 = vmatmul.mubr.msk.f32.gmra.mxu1 %vm623_vm0, %v4519_v31  ;;  %v3657_v63 = vpop.eup %3656 }
 0x2c6   : > { %v4536_v44 = vadd.f32 %v1718_v18, %v1285_v29  ;;  %v3659_v0 = vpop.eup %3658  ;;  %3672 = vtanh.f32 %v1750_v15 }
 0x2c7   : > { %2530 = vrot.lane.b32.xlu1 %v2483_v26, %s3705_s6  ;;  %v3474_v47 = vpop.f32.mrf.mxu1  ;;  %v3661_v14 = vpop.eup %3660 }
 0x2c8   : > { %3533 = vmatprep.mubr.msk.f32.mxu1 %vm623_vm0, %v4536_v44  ;;  %v1752_v25 = vadd.f32 %v3474_v47, %v1300_v11  ;;  %3674 = vtanh.f32 %v4536_v44  ;;  %v4620_v18 = vpop.permute.xlu0 %2572 }
 0x2c9   : > { %2528 = vrot.lane.b32.xlu0 %v2482_v48, %s3705_s6  ;;  %v1728_v52 = vpop.f32.mrf.mxu1  ;;  %3534 = vmatmul.mubr.msk.f32.gmra.mxu1 %vm623_vm0, %v1750_v15 }
 0x2ca   : > { %v4549_v20 = vadd.f32 %v1728_v52, %v1295_v40  ;;  %3676 = vtanh.f32 %v1752_v25  ;;  %v608_v40 = vld [vmem:[%s4963_s1 + $0xc8] sm:$0xff]  ;;  %v607_v52 = vld [vmem:[%s4963_s1 + $0xc0] sm:$0xff] }
 0x2cb   : > { %2690 = vrot.lane.b32.xlu1 %v4482_v38, %s3706_s8  ;;  %v613_v38 = vld [vmem:[%s4963_s1 + $0xf0] sm:$0xff] }
 0x2cc   : > { %3536 = vmatprep.mubr.msk.f32.mxu1 %vm623_vm0, %v4549_v20  ;;  %3541 = vmatprep.subr.mxu0 %v613_v38  ;;  %3678 = vtanh.f32 %v4549_v20  ;;  %v4627_v47 = vpop.permute.xlu0 %2576 }
 0x2cd   : > { %2688 = vrot.lane.b32.xlu0 %v4480_v23, %s3706_s8  ;;  %3537 = vmatmul.mubr.msk.f32.gmra.mxu1 %vm623_vm0, %v1752_v25  ;;  %v4584_v23 = vpop.permute.xlu1 %2566 }
 0x2ce   : > { %3542 = vmatpush3.msra.mxu0 %v613_v38 }
 0x2cf   : > { %2630 = vrot.lane.b32.xlu1 %v3649_v12, %s3705_s6  ;;  %3543 = vmatprep.subr.mxu0 %v612_v19 }
 0x2d0   : > { %3544 = vmatpush3.msra.mxu0 %v612_v19 }
 0x2d1   : > { %2628 = vrot.lane.b32.xlu0 %v3651_v53, %s3705_s6  ;;  %v4601_v13 = vpop.permute.xlu1 %2570  ;;  %v4640_v53 = vpop.permute.xlu0 %2580 }
 0x2d3   : > { %2694 = vrot.lane.b32.xlu1 %v4502_v10, %s3706_s8  ;;  %v611_v10 = vld [vmem:[%s4963_s1 + $0xe0] sm:$0xff] }
 0x2d4   : > { %3545 = vmatprep.subr.mxu0 %v611_v10 }
 0x2d5   : > { %2692 = vrot.lane.b32.xlu0 %v4499_v56, %s3706_s8  ;;  %3546 = vmatpush3.msra.mxu0 %v611_v10  ;;  %v3663_v56 = vpop.eup %3662  ;;  %v4616_v6 = vpop.permute.xlu1 %2574 }
 0x2d6   : > { %v3665_v29 = vpop.eup %3664 }
 0x2d7   : > { %2634 = vrot.lane.b32.xlu1 %v3653_v59, %s3705_s6  ;;  %v3667_v26 = vpop.eup %3666 }
 0x2d8   : > { %v3669_v8 = vpop.eup %3668 }
 0x2d9   : > { %2632 = vrot.lane.b32.xlu0 %v3655_v49, %s3705_s6  ;;  %v4624_v48 = vpop.permute.xlu1 %2578  ;;  %v4645_v49 = vpop.permute.xlu0 %2584 }
 0x2db   : > { %2698 = vrot.lane.b32.xlu1 %v4519_v31, %s3706_s8  ;;  %v610_v31 = vld [vmem:[%s4963_s1 + $0xd8] sm:$0xff] }
 0x2dc   : > { %3547 = vmatprep.subr.mxu0 %v610_v31 }
 0x2dd   : > { %2696 = vrot.lane.b32.xlu0 %v4516_v1, %s3706_s8  ;;  %3548 = vmatpush3.msra.mxu0 %v610_v31  ;;  %v609_v1 = vld [vmem:[%s4963_s1 + $0xd0] sm:$0xff] }
 0x2de   : > { %3549 = vmatprep.subr.mxu0 %v609_v1 }
 0x2df   : > { %2638 = vrot.lane.b32.xlu1 %v3657_v63, %s3705_s6  ;;  %3550 = vmatpush3.msra.mxu0 %v609_v1  ;;  %v4649_v63 = vpop.permute.xlu0 %2588 }
 0x2e0   : > { %3551 = vmatprep.subr.mxu0 %v608_v40  ;;  %4966 = vst [vmem:[#allocation4_spill] sm:$0xff] %v4649_v63 }
 0x2e1   : > { %2636 = vrot.lane.b32.xlu0 %v3659_v0, %s3705_s6  ;;  %3552 = vmatpush3.msra.mxu0 %v608_v40 }
 0x2e2   : > { %3553 = vmatprep.subr.mxu0 %v607_v52 }
 0x2e3   : > { %2702 = vrot.lane.b32.xlu1 %v1750_v15, %s3706_s8  ;;  %3554 = vmatpush3.msra.mxu0 %v607_v52  ;;  %v4653_v38 = vpop.permute.xlu0 %2592 }
 0x2e4   : > { %4968 = vst [vmem:[#allocation6_spill] sm:$0xff] %v4653_v38 }
 0x2e5   : > { %2700 = vrot.lane.b32.xlu0 %v4536_v44, %s3706_s8  ;;  %v3671_v44 = vpop.eup %3670 }
 0x2e6   : > { %v3673_v15 = vpop.eup %3672 }
 0x2e7   : > { %2642 = vrot.lane.b32.xlu1 %v3661_v14, %s3705_s6  ;;  %v3675_v11 = vpop.eup %3674 }
 0x2e9   : > { %2640 = vrot.lane.b32.xlu0 %v3663_v56, %s3705_s6 }
 0x2eb   : > { %2706 = vrot.lane.b32.xlu1 %v1752_v25, %s3706_s8  ;;  %v4637_v25 = vpop.permute.xlu1 %2582 }
 0x2ed   : > { %2704 = vrot.lane.b32.xlu0 %v4549_v20, %s3706_s8  ;;  %v3677_v20 = vpop.eup %3676 }
 0x2ee   : > { %v3679_v12 = vpop.eup %3678 }
 0x2ef   : > { %2646 = vrot.lane.b32.xlu1 %v3665_v29, %s3705_s6  ;;  %v4643_v59 = vpop.permute.xlu1 %2586 }
 0x2f1   : > { %2644 = vrot.lane.b32.xlu0 %v3667_v26, %s3705_s6 }
 0x2f3   : > { %2650 = vrot.lane.b32.xlu1 %v3669_v8, %s3705_s6  ;;  %v4647_v51 = vpop.permute.xlu1 %2590 }
 0x2f4   : > { %4965 = vst [vmem:[#allocation3_spill] sm:$0xff] %v4647_v51 }
 0x2f5   : > { %2648 = vrot.lane.b32.xlu0 %v3671_v44, %s3705_s6 }
 0x2f7   : > { %2654 = vrot.lane.b32.xlu1 %v3673_v15, %s3705_s6  ;;  %v4651_v0 = vpop.permute.xlu1 %2594 }
 0x2f8   : > { %4967 = vst [vmem:[#allocation5_spill] sm:$0xff] %v4651_v0 }
 0x2f9   : > { %2652 = vrot.lane.b32.xlu0 %v3675_v11, %s3705_s6 }
 0x2fb   : > { %2658 = vrot.lane.b32.xlu1 %v3677_v20, %s3705_s6 }
 0x2fd   : > { %2656 = vrot.lane.b32.xlu0 %v3679_v12, %s3705_s6 }
 0x310   : > { %v4655_v19 = vpop.permute.xlu1 %2502 }
 0x312   : > { %v4657_v10 = vpop.permute.xlu0 %2500 }
 0x314   : > { %v4659_v14 = vpop.permute.xlu1 %2506 }
 0x316   : > { %v4661_v56 = vpop.permute.xlu0 %2504 }
 0x318   : > { %v4665_v31 = vpop.permute.xlu1 %2510 }
 0x31a   : > { %v4667_v1 = vpop.permute.xlu0 %2508 }
 0x31c   : > { %v4669_v29 = vpop.permute.xlu1 %2514 }
 0x31e   : > { %v4671_v26 = vpop.permute.xlu0 %2512 }
 0x321   : > { %v4673_v8 = vpop.permute.xlu1 %2518 }
 0x323   : > { %v4675_v44 = vpop.permute.xlu0 %2516 }
 0x325   : > { %v2679_v15 = vpop.permute.xlu1 %2678 }
 0x326   : > { %v2774_v40 = vsel %vm623_vm0, %v4212_v17, %v2679_v15 }
 0x327   : > { %v2790_v11 = vsel %vm981_vm1, %v2774_v40, 0.0  ;;  %v2677_v52 = vpop.permute.xlu0 %2676 }
 0x328   : > { %2808 = vst [vmem:[%s4680_s11 + $0x18] sm:$0xff] %v2790_v11  ;;  %v2773_v20 = vsel %vm623_vm0, %v4216_v21, %v2677_v52 }
 0x329   : > { %v2789_v12 = vsel %vm981_vm1, %v2773_v20, 0.0  ;;  %v4689_v38 = vpop.permute.xlu1 %2522 }
 0x32a   : > { %2806 = vst [vmem:[%s4680_s11 + $0x8] sm:$0xff] %v2789_v12 }
 0x32b   : > { %v4692_v0 = vpop.permute.xlu0 %2520 }
 0x32d   : > { %v2683_v63 = vpop.permute.xlu1 %2682 }
 0x32e   : > { %v2776_v17 = vsel %vm623_vm0, %v4220_v28, %v2683_v63 }
 0x32f   : > { %v2792_v15 = vsel %vm981_vm1, %v2776_v17, 0.0  ;;  %v2681_v40 = vpop.permute.xlu0 %2680 }
 0x330   : > { %2812 = vst [vmem:[%s4680_s11 + $0x38] sm:$0xff] %v2792_v15  ;;  %v2775_v21 = vsel %vm623_vm0, %v4228_v32, %v2681_v40 }
 0x331   : > { %v2791_v11 = vsel %vm981_vm1, %v2775_v21, 0.0  ;;  %v4701_v52 = vpop.permute.xlu1 %2526 }
 0x332   : > { %2810 = vst [vmem:[%s4680_s11 + $0x28] sm:$0xff] %v2791_v11 }
 0x333   : > { %v4704_v20 = vpop.permute.xlu0 %2524 }
 0x334   : > { %4969 = vst [vmem:[#allocation7_spill] sm:$0xff] %v4704_v20 }
 0x335   : > { %v2687_v12 = vpop.permute.xlu1 %2686 }
 0x336   : > { %v2778_v28 = vsel %vm623_vm0, %v4232_v35, %v2687_v12 }
 0x337   : > { %v2794_v63 = vsel %vm981_vm1, %v2778_v28, 0.0  ;;  %v2685_v17 = vpop.permute.xlu0 %2684 }
 0x338   : > { %2816 = vst [vmem:[%s4680_s11 + $0x58] sm:$0xff] %v2794_v63  ;;  %v2777_v32 = vsel %vm623_vm0, %v4240_v39, %v2685_v17 }
 0x339   : > { %v2793_v15 = vsel %vm981_vm1, %v2777_v32, 0.0  ;;  %v4713_v40 = vpop.permute.xlu1 %2530 }
 0x33a   : > { %4970 = vst [vmem:[#allocation8_spill] sm:$0xff] %v4713_v40  ;;  %2814 = vst [vmem:[%s4680_s11 + $0x48] sm:$0xff] %v2793_v15 }
 0x33b   : > { %v4716_v21 = vpop.permute.xlu0 %2528 }
 0x33c   : > { %4971 = vst [vmem:[#allocation9_spill] sm:$0xff] %v4716_v21 }
 0x33d   : > { %v2691_v11 = vpop.permute.xlu1 %2690 }
 0x33e   : > { %v2780_v35 = vsel %vm623_vm0, %v4244_v43, %v2691_v11 }
 0x33f   : > { %v2796_v12 = vsel %vm981_vm1, %v2780_v35, 0.0  ;;  %v2689_v28 = vpop.permute.xlu0 %2688 }
 0x340   : > { %2820 = vst [vmem:[%s4680_s11 + $0x78] sm:$0xff] %v2796_v12  ;;  %v2779_v39 = vsel %vm623_vm0, %v4252_v46, %v2689_v28 }
 0x341   : > { %v2795_v63 = vsel %vm981_vm1, %v2779_v39, 0.0  ;;  %v4725_v17 = vpop.permute.xlu1 %2630 }
 0x342   : > { %2818 = vst [vmem:[%s4680_s11 + $0x68] sm:$0xff] %v2795_v63 }
 0x343   : > { %v4728_v32 = vpop.permute.xlu0 %2628 }
 0x345   : > { %v2695_v15 = vpop.permute.xlu1 %2694 }
 0x346   : > { %v2782_v43 = vsel %vm623_vm0, %v4257_v50, %v2695_v15 }
 0x347   : > { %v2798_v11 = vsel %vm981_vm1, %v2782_v43, 0.0  ;;  %v2693_v35 = vpop.permute.xlu0 %2692 }
 0x348   : > { %2824 = vst [vmem:[%s4680_s11 + $0x98] sm:$0xff] %v2798_v11  ;;  %v2781_v46 = vsel %vm623_vm0, %v4267_v55, %v2693_v35 }
 0x349   : > { %v2797_v12 = vsel %vm981_vm1, %v2781_v46, 0.0  ;;  %v4737_v28 = vpop.permute.xlu1 %2634 }
 0x34a   : > { %2822 = vst [vmem:[%s4680_s11 + $0x88] sm:$0xff] %v2797_v12 }
 0x34b   : > { %v4740_v39 = vpop.permute.xlu0 %2632 }
 0x34d   : > { %v2699_v63 = vpop.permute.xlu1 %2698 }
 0x34e   : > { %v2784_v50 = vsel %vm623_vm0, %v4273_v60, %v2699_v63 }
 0x34f   : > { %v2800_v15 = vsel %vm981_vm1, %v2784_v50, 0.0  ;;  %v2697_v43 = vpop.permute.xlu0 %2696 }
 0x350   : > { %2828 = vst [vmem:[%s4680_s11 + $0xb8] sm:$0xff] %v2800_v15  ;;  %v2783_v55 = vsel %vm623_vm0, %v4283_v2, %v2697_v43 }
 0x351   : > { %v2799_v11 = vsel %vm981_vm1, %v2783_v55, 0.0  ;;  %v4749_v35 = vpop.permute.xlu1 %2638 }
 0x352   : > { %2826 = vst [vmem:[%s4680_s11 + $0xa8] sm:$0xff] %v2799_v11 }
 0x353   : > { %v4752_v46 = vpop.permute.xlu0 %2636 }
 0x355   : > { %v2703_v12 = vpop.permute.xlu1 %2702 }
 0x356   : > { %v2786_v60 = vsel %vm623_vm0, %v4291_v9, %v2703_v12 }
 0x357   : > { %v2802_v63 = vsel %vm981_vm1, %v2786_v60, 0.0  ;;  %v2701_v50 = vpop.permute.xlu0 %2700 }
 0x358   : > { %2832 = vst [vmem:[%s4680_s11 + $0xd8] sm:$0xff] %v2802_v63  ;;  %v2785_v2 = vsel %vm623_vm0, %v4301_v16, %v2701_v50  ;;  %v4777_v50 = vld [vmem:[%s4963_s1 + $0x102] ss:$0 sm:$0xff] }
 0x359   : > { %v2801_v15 = vsel %vm981_vm1, %v2785_v2, 0.0  ;;  %v4761_v43 = vpop.permute.xlu1 %2642 }
 0x35a   : > { %2830 = vst [vmem:[%s4680_s11 + $0xc8] sm:$0xff] %v2801_v15 }
 0x35b   : > { %v4764_v55 = vpop.permute.xlu0 %2640 }
 0x35d   : > { %v2707_v11 = vpop.permute.xlu1 %2706 }
 0x35e   : > { %v2788_v21 = vsel %vm623_vm0, %v4309_v30, %v2707_v11 }
 0x35f   : > { %v2804_v9 = vsel %vm981_vm1, %v2788_v21, 0.0  ;;  %v2705_v12 = vpop.permute.xlu0 %2704 }
 0x360   : > { %2836 = vst [vmem:[%s4680_s11 + $0xf8] sm:$0xff] %v2804_v9  ;;  %v2787_v60 = vsel %vm623_vm0, %v4319_v37, %v2705_v12 }
 0x361   : > { %v2803_v16 = vsel %vm981_vm1, %v2787_v60, 0.0 }
 0x362   : > { %2834 = vst [vmem:[%s4680_s11 + $0xe8] sm:$0xff] %v2803_v16 }
 0x371   : > { %v3517_v63 = vpop.f32.mrf.mxu1 }
 0x372   : > { %v2156_v2 = vadd.f32 %v3517_v63, %v4385_v36 }
 0x373   : > { %v2076_v15 = vpop.f32.mrf.mxu1 }
 0x374   : > { %v2155_v30 = vadd.f32 %v2076_v15, %v4390_v42  ;;  %v2176_v21 = vadd.f32 %v4777_v50, %v2156_v2 }
 0x375   : > { %v3520_v11 = vpop.f32.mrf.mxu1 }
 0x376   : > { %v2175_v9 = vadd.f32 %v4777_v50, %v2155_v30  ;;  %v2158_v37 = vadd.f32 %v3520_v11, %v4394_v45  ;;  %v2192_v40 = vmax.f32 %v2176_v21, 0.0 }
 0x377   : > { %v2086_v12 = vpop.f32.mrf.mxu1 }
 0x378   : > { %v2191_v60 = vmax.f32 %v2175_v9, 0.0  ;;  %v2157_v16 = vadd.f32 %v2086_v12, %v4400_v24  ;;  %v2178_v20 = vadd.f32 %v4777_v50, %v2158_v37 }
 0x379   : > { %v3523_v51 = vpop.f32.mrf.mxu1 }
 0x37a   : > { %v2177_v36 = vadd.f32 %v4777_v50, %v2157_v16  ;;  %v2160_v63 = vadd.f32 %v3523_v51, %v4404_v27  ;;  %3555 = vmatprep.mubr.msk.f32.mxu0 %vm981_vm1, %v2191_v60  ;;  %v2194_v15 = vmax.f32 %v2178_v20, 0.0 }
 0x37b   : > { %v2096_v42 = vpop.f32.mrf.mxu1  ;;  %3556 = vmatmul.mubr.msk.f32.vlgmr.msra.gmra.mxu0 %vm981_vm1, %v2192_v40 }
 0x37c   : > { %v2193_v2 = vmax.f32 %v2177_v36, 0.0  ;;  %v2159_v45 = vadd.f32 %v2096_v42, %v4410_v54  ;;  %v2180_v30 = vadd.f32 %v4777_v50, %v2160_v63 }
 0x37d   : > { %v3526_v24 = vpop.f32.mrf.mxu1 }
 0x37e   : > { %v2179_v21 = vadd.f32 %v4777_v50, %v2159_v45  ;;  %v2162_v11 = vadd.f32 %v3526_v24, %v4414_v57  ;;  %3558 = vmatprep.mubr.msk.f32.mxu0 %vm981_vm1, %v2193_v2  ;;  %v2196_v40 = vmax.f32 %v2180_v30, 0.0 }
 0x37f   : > { %v2106_v9 = vpop.f32.mrf.mxu1  ;;  %3559 = vmatmul.mubr.msk.f32.gmra.mxu0 %vm981_vm1, %v2194_v15 }
 0x380   : > { %v2195_v27 = vmax.f32 %v2179_v21, 0.0  ;;  %v2161_v51 = vadd.f32 %v2106_v9, %v4420_v61  ;;  %v2182_v37 = vadd.f32 %v4777_v50, %v2162_v11 }
 0x381   : > { %v3529_v54 = vpop.f32.mrf.mxu1 }
 0x382   : > { %v2181_v20 = vadd.f32 %v4777_v50, %v2161_v51  ;;  %v2164_v12 = vadd.f32 %v3529_v54, %v4425_v3  ;;  %3561 = vmatprep.mubr.msk.f32.mxu0 %vm981_vm1, %v2195_v27  ;;  %v2198_v36 = vmax.f32 %v2182_v37, 0.0 }
 0x383   : > { %v2116_v60 = vpop.f32.mrf.mxu1  ;;  %3562 = vmatmul.mubr.msk.f32.gmra.mxu0 %vm981_vm1, %v2196_v40 }
 0x384   : > { %v2197_v57 = vmax.f32 %v2181_v20, 0.0  ;;  %v2163_v16 = vadd.f32 %v2116_v60, %v4432_v33  ;;  %v2184_v63 = vadd.f32 %v4777_v50, %v2164_v12 }
 0x385   : > { %v3532_v61 = vpop.f32.mrf.mxu1 }
 0x386   : > { %v2183_v42 = vadd.f32 %v4777_v50, %v2163_v16  ;;  %v2166_v2 = vadd.f32 %v3532_v61, %v4437_v22  ;;  %3564 = vmatprep.mubr.msk.f32.mxu0 %vm981_vm1, %v2197_v57  ;;  %v2200_v30 = vmax.f32 %v2184_v63, 0.0 }
 0x387   : > { %v2126_v45 = vpop.f32.mrf.mxu1  ;;  %3565 = vmatmul.mubr.msk.f32.gmra.mxu0 %vm981_vm1, %v2198_v36 }
 0x388   : > { %v2199_v3 = vmax.f32 %v2183_v42, 0.0  ;;  %v2165_v15 = vadd.f32 %v2126_v45, %v4452_v41  ;;  %v2186_v24 = vadd.f32 %v4777_v50, %v2166_v2 }
 0x389   : > { %v3535_v33 = vpop.f32.mrf.mxu1 }
 0x38a   : > { %v2185_v21 = vadd.f32 %v4777_v50, %v2165_v15  ;;  %v2168_v11 = vadd.f32 %v3535_v33, %v4471_v4  ;;  %3567 = vmatprep.mubr.msk.f32.mxu0 %vm981_vm1, %v2199_v3  ;;  %v2202_v51 = vmax.f32 %v2186_v24, 0.0 }
 0x38b   : > { %v2136_v9 = vpop.f32.mrf.mxu1  ;;  %3568 = vmatmul.mubr.msk.f32.gmra.mxu0 %vm981_vm1, %v2200_v30 }
 0x38c   : > { %v2201_v22 = vmax.f32 %v2185_v21, 0.0  ;;  %v2167_v27 = vadd.f32 %v2136_v9, %v4488_v7  ;;  %v2188_v40 = vadd.f32 %v4777_v50, %v2168_v11 }
 0x38d   : > { %v3538_v41 = vpop.f32.mrf.mxu1 }
 0x38e   : > { %v2187_v37 = vadd.f32 %v4777_v50, %v2167_v27  ;;  %v2170_v54 = vadd.f32 %v3538_v41, %v4507_v58  ;;  %3570 = vmatprep.mubr.msk.f32.mxu0 %vm981_vm1, %v2201_v22  ;;  %v2204_v60 = vmax.f32 %v2188_v40, 0.0  ;;  %v2647_v40 = vpop.permute.xlu1 %2646 }
 0x38f   : > { %v2146_v20 = vpop.f32.mrf.mxu1  ;;  %3571 = vmatmul.mubr.msk.f32.gmra.mxu0 %vm981_vm1, %v2202_v51 }
 0x390   : > { %v2203_v4 = vmax.f32 %v2187_v37, 0.0  ;;  %v2169_v12 = vadd.f32 %v2146_v20, %v4525_v34  ;;  %v2190_v57 = vadd.f32 %v4777_v50, %v2170_v54  ;;  %v4830_v34 = vld [vmem:[%s4963_s1 + $0x103] ss:$0 sm:$0xff]  ;;  %v2645_v54 = vpop.permute.xlu0 %2644 }
 0x392   : > { %v2189_v7 = vadd.f32 %v4777_v50, %v2169_v12  ;;  %3573 = vmatprep.mubr.msk.f32.mxu0 %vm981_vm1, %v2203_v4  ;;  %v2206_v58 = vmax.f32 %v2190_v57, 0.0  ;;  %v2651_v57 = vpop.permute.xlu1 %2650 }
 0x393   : > { %3574 = vmatmul.mubr.msk.f32.gmra.mxu0 %vm981_vm1, %v2204_v60 }
 0x394   : > { %v2205_v16 = vmax.f32 %v2189_v7, 0.0 }
 0x396   : > { %3576 = vmatprep.mubr.msk.f32.mxu0 %vm981_vm1, %v2205_v16 }
 0x397   : > { %3577 = vmatmul.mubr.msk.f32.gmra.mxu0 %vm981_vm1, %v2206_v58  ;;  %v2649_v58 = vpop.permute.xlu0 %2648 }
 0x43b   : > { %v3557_v36 = vpop.f32.mrf.mxu0 }
 0x43c   : > { %v2331_v63 = vadd.f32 %v3557_v36, %v4830_v34 }
 0x43d   : > { %v2325_v50 = vpop.f32.mrf.mxu0 }
 0x43e   : > { %v2725_v61 = vsel %vm623_vm0, %v2331_v63, %v4655_v19  ;;  %v2326_v42 = vadd.f32 %v4830_v34, %v2325_v50 }
 0x43f   : > { %v2741_v2 = vsel %vm981_vm1, %v2725_v61, %v4584_v23  ;;  %v3560_v45 = vpop.f32.mrf.mxu0 }
 0x440   : > { %v2758_v3 = vsel %vm2756_vm2, %v2741_v2, %v4725_v17  ;;  %v2724_v15 = vsel %vm623_vm0, %v2326_v42, %v4657_v10  ;;  %v2341_v30 = vadd.f32 %v3560_v45, %v4830_v34  ;;  %v2655_v45 = vpop.permute.xlu1 %2654 }
 0x441   : > { %2807 = vst [vmem:[%s4680_s11 + $0x10] sm:$0xff] %v2758_v3  ;;  %v2740_v24 = vsel %vm981_vm1, %v2724_v15, %v4591_v62  ;;  %v2335_v19 = vpop.f32.mrf.mxu0 }
 0x442   : > { %v2757_v33 = vsel %vm2756_vm2, %v2740_v24, %v4728_v32  ;;  %v2727_v23 = vsel %vm623_vm0, %v2341_v30, %v4659_v14  ;;  %v2336_v21 = vadd.f32 %v4830_v34, %v2335_v19  ;;  %v2653_v24 = vpop.permute.xlu0 %2652 }
 0x443   : > { %2805 = vst [vmem:[%s4680_s11] sm:$0xff] %v2757_v33  ;;  %v2743_v10 = vsel %vm981_vm1, %v2727_v23, %v4601_v13  ;;  %v3563_v17 = vpop.f32.mrf.mxu0 }
 0x444   : > { %v2760_v11 = vsel %vm2756_vm2, %v2743_v10, %v4737_v28  ;;  %v2726_v62 = vsel %vm623_vm0, %v2336_v21, %v4661_v56  ;;  %v2351_v9 = vadd.f32 %v3563_v17, %v4830_v34  ;;  %v4973_v21 = vld [vmem:[#allocation7_spill] sm:$0xff] }
 0x445   : > { %2811 = vst [vmem:[%s4680_s11 + $0x30] sm:$0xff] %v2760_v11  ;;  %v2742_v14 = vsel %vm981_vm1, %v2726_v62, %v4607_v5  ;;  %v2345_v32 = vpop.f32.mrf.mxu0 }
 0x446   : > { %v2759_v22 = vsel %vm2756_vm2, %v2742_v14, %v4740_v39  ;;  %v2729_v13 = vsel %vm623_vm0, %v2351_v9, %v4665_v31  ;;  %v2346_v28 = vadd.f32 %v4830_v34, %v2345_v32  ;;  %v4975_v9 = vld [vmem:[#allocation8_spill] sm:$0xff] }
 0x447   : > { %2809 = vst [vmem:[%s4680_s11 + $0x20] sm:$0xff] %v2759_v22  ;;  %v2745_v56 = vsel %vm981_vm1, %v2729_v13, %v4616_v6  ;;  %v3566_v27 = vpop.f32.mrf.mxu0  ;;  %v2659_v22 = vpop.permute.xlu1 %2658  ;;  %v4976_v13 = vld [vmem:[#allocation5_spill] sm:$0xff] }
 0x448   : > { %v2762_v51 = vsel %vm2756_vm2, %v2745_v56, %v4749_v35  ;;  %v2728_v5 = vsel %vm623_vm0, %v2346_v28, %v4667_v1  ;;  %v2361_v39 = vadd.f32 %v3566_v27, %v4830_v34  ;;  %v4977_v27 = vld [vmem:[#allocation9_spill] sm:$0xff] }
 0x449   : > { %2815 = vst [vmem:[%s4680_s11 + $0x50] sm:$0xff] %v2762_v51  ;;  %v2744_v31 = vsel %vm981_vm1, %v2728_v5, %v4620_v18  ;;  %v2355_v41 = vpop.f32.mrf.mxu0  ;;  %v2657_v5 = vpop.permute.xlu0 %2656 }
 0x44a   : > { %v2761_v37 = vsel %vm2756_vm2, %v2744_v31, %v4752_v46  ;;  %v2731_v6 = vsel %vm623_vm0, %v2361_v39, %v4669_v29  ;;  %v2356_v35 = vadd.f32 %v4830_v34, %v2355_v41  ;;  %v4978_v39 = vld [vmem:[#allocation6_spill] sm:$0xff] }
 0x44b   : > { %2813 = vst [vmem:[%s4680_s11 + $0x40] sm:$0xff] %v2761_v37  ;;  %v2747_v1 = vsel %vm981_vm1, %v2731_v6, %v4624_v48  ;;  %v3569_v20 = vpop.f32.mrf.mxu0 }
 0x44c   : > { %v2764_v4 = vsel %vm2756_vm2, %v2747_v1, %v4761_v43  ;;  %v2730_v18 = vsel %vm623_vm0, %v2356_v35, %v4671_v26  ;;  %v2371_v46 = vadd.f32 %v3569_v20, %v4830_v34 }
 0x44d   : > { %2819 = vst [vmem:[%s4680_s11 + $0x70] sm:$0xff] %v2764_v4  ;;  %v2746_v29 = vsel %vm981_vm1, %v2730_v18, %v4627_v47  ;;  %v2365_v12 = vpop.f32.mrf.mxu0 }
 0x44e   : > { %v2763_v60 = vsel %vm2756_vm2, %v2746_v29, %v4764_v55  ;;  %v2733_v48 = vsel %vm623_vm0, %v2371_v46, %v4673_v8  ;;  %v2366_v43 = vadd.f32 %v4830_v34, %v2365_v12 }
 0x44f   : > { %2817 = vst [vmem:[%s4680_s11 + $0x60] sm:$0xff] %v2763_v60  ;;  %v2749_v26 = vsel %vm981_vm1, %v2733_v48, %v4637_v25  ;;  %v3572_v7 = vpop.f32.mrf.mxu0 }
 0x450   : > { %v2766_v16 = vsel %vm2756_vm2, %v2749_v26, %v2647_v40  ;;  %v2732_v47 = vsel %vm623_vm0, %v2366_v43, %v4675_v44  ;;  %v2381_v55 = vadd.f32 %v3572_v7, %v4830_v34 }
 0x451   : > { %2823 = vst [vmem:[%s4680_s11 + $0x90] sm:$0xff] %v2766_v16  ;;  %v2748_v8 = vsel %vm981_vm1, %v2732_v47, %v4640_v53  ;;  %v2375_v36 = vpop.f32.mrf.mxu0 }
 0x452   : > { %v2765_v63 = vsel %vm2756_vm2, %v2748_v8, %v2645_v54  ;;  %v2735_v25 = vsel %vm623_vm0, %v2381_v55, %v4689_v38  ;;  %v2376_v50 = vadd.f32 %v4830_v34, %v2375_v36 }
 0x453   : > { %2821 = vst [vmem:[%s4680_s11 + $0x80] sm:$0xff] %v2765_v63  ;;  %v2751_v44 = vsel %vm981_vm1, %v2735_v25, %v4643_v59  ;;  %v3575_v61 = vpop.f32.mrf.mxu0 }
 0x454   : > { %v2768_v42 = vsel %vm2756_vm2, %v2751_v44, %v2651_v57  ;;  %v2734_v2 = vsel %vm623_vm0, %v2376_v50, %v4692_v0  ;;  %v2391_v53 = vadd.f32 %v3575_v61, %v4830_v34  ;;  %v4972_v0 = vld [vmem:[#allocation3_spill] sm:$0xff] }
 0x455   : > { %2827 = vst [vmem:[%s4680_s11 + $0xb0] sm:$0xff] %v2768_v42  ;;  %v2750_v38 = vsel %vm981_vm1, %v2734_v2, %v4645_v49  ;;  %v2385_v3 = vpop.f32.mrf.mxu0 }
 0x456   : > { %v2767_v15 = vsel %vm2756_vm2, %v2750_v38, %v2649_v58  ;;  %v2737_v59 = vsel %vm623_vm0, %v2391_v53, %v4701_v52  ;;  %v2386_v30 = vadd.f32 %v4830_v34, %v2385_v3  ;;  %v4974_v52 = vld [vmem:[#allocation4_spill] sm:$0xff] }
 0x457   : > { %2825 = vst [vmem:[%s4680_s11 + $0xa0] sm:$0xff] %v2767_v15  ;;  %v2753_v19 = vsel %vm981_vm1, %v2737_v59, %v4972_v0  ;;  %v3578_v33 = vpop.f32.mrf.mxu0 }
 0x458   : > { %v2770_v23 = vsel %vm2756_vm2, %v2753_v19, %v2655_v45  ;;  %v2736_v49 = vsel %vm623_vm0, %v2386_v30, %v4973_v21  ;;  %v2401_v10 = vadd.f32 %v3578_v33, %v4830_v34 }
 0x459   : > { %2831 = vst [vmem:[%s4680_s11 + $0xd0] sm:$0xff] %v2770_v23  ;;  %v2752_v17 = vsel %vm981_vm1, %v2736_v49, %v4974_v52  ;;  %v2395_v11 = vpop.f32.mrf.mxu0 }
 0x45a   : > { %v2769_v62 = vsel %vm2756_vm2, %v2752_v17, %v2653_v24  ;;  %v2739_v14 = vsel %vm623_vm0, %v2401_v10, %v4975_v9  ;;  %v2396_v32 = vadd.f32 %v4830_v34, %v2395_v11 }
 0x45b   : > { %2829 = vst [vmem:[%s4680_s11 + $0xc0] sm:$0xff] %v2769_v62  ;;  %v2755_v28 = vsel %vm981_vm1, %v2739_v14, %v4976_v13 }
 0x45c   : > { %v2772_v56 = vsel %vm2756_vm2, %v2755_v28, %v2659_v22  ;;  %v2738_v51 = vsel %vm623_vm0, %v2396_v32, %v4977_v27 }
 0x45d   : > { %2835 = vst [vmem:[%s4680_s11 + $0xf0] sm:$0xff] %v2772_v56  ;;  %v2754_v40 = vsel %vm981_vm1, %v2738_v51, %v4978_v39 }
 0x45e   : > { %v2771_v31 = vsel %vm2756_vm2, %v2754_v40, %v2657_v5 }
 0x45f   : > { %2833 = vst [vmem:[%s4680_s11 + $0xe0] sm:$0xff] %v2771_v31 }
 0x460 PF: > { %p9_p9 = scmp.ge.s32.totalorder %s3739_s13, 4   ;;  %s4979_s9 = smov %s3698_s10 }
 0x461   : > { %s4980_s10 = smov %s3748_s16  ;;  %s4981_s11 = smov %s3739_s13 }
 0x462   :  { %11 = sbr.rel (!%p9_p9) target bundleno = 2 (0x2), region = 104 }

</bundles_post_ra>
